<compile_context>
chip_gen: v6e
topology: v6e:2x2x1
jax: 0.10.0
libtpu: 0.0.40
codegen_flags: <defaults>
</compile_context>

<pallas_src>
import jax
import jax.numpy as jnp
from jax.experimental import pallas as pl
from jax.experimental.pallas import tpu as pltpu


# ----------------------------- Pallas kernel ------------------------------- #

def _encoder_kernel(xg_ref,      # (T, Bp, 4H) f32: emb(src) @ W_ih0 + b0 (hoisted)
                    whh0_ref,    # (H, 4H)     layer-0 recurrent weight
                    w1_ref,      # (2H, 4H)    layer-1 fused [W_ih1 ; W_hh1]
                    b1_ref,      # (Bp, 4H)    layer-1 bias, pre-broadcast
                    out_ref,     # (T, Bp, H)  encoder outputs (top-layer h per step)
                    h_out_ref,   # (2, Bp, H)  final hidden states
                    c_out_ref):  # (2, Bp, H)  final cell states
    T, Bp, G = xg_ref.shape
    H = G // 4

    # lane mask: tanh on the "g" gate columns, sigmoid elsewhere (full-vreg EUP
    # passes, no narrow-slice relayouts).  Hoisted out of the time loop.
    lane = jax.lax.broadcasted_iota(jnp.int32, (Bp, G), 1)
    g_mask = (lane >= 2 * H) & (lane < 3 * H)

    def gate_act(gates):
        return jnp.where(g_mask, jnp.tanh(gates), jax.nn.sigmoid(gates))

    def cell(gates, c_prev):
        a = gate_act(gates)
        i_g = a[:, 0 * H:1 * H]
        f_g = a[:, 1 * H:2 * H]
        g_g = a[:, 2 * H:3 * H]
        o_g = a[:, 3 * H:4 * H]
        c_new = f_g * c_prev + i_g * g_g
        h_new = o_g * jnp.tanh(c_new)
        return h_new, c_new

    def step(t, carry):
        h0, c0, h1, c1 = carry
        # layer 0: input projection hoisted -> one recurrent dot per step
        g0 = xg_ref[t] + jnp.dot(h0, whh0_ref[...],
                                 preferred_element_type=jnp.float32)
        h0, c0 = cell(g0, c0)
        # inter-layer dropout: identity (eval mode)
        # layer 1: single fused dot over [h0 | h1]
        g1 = (jnp.dot(jnp.concatenate([h0, h1], axis=1), w1_ref[...],
                      preferred_element_type=jnp.float32) + b1_ref[...])
        h1, c1 = cell(g1, c1)
        out_ref[t] = h1
        return h0, c0, h1, c1

    zeros = jnp.zeros((Bp, H), jnp.float32)
    h0, c0, h1, c1 = jax.lax.fori_loop(
        0, T, step, (zeros, zeros, zeros, zeros), unroll=True)

    # final states written exactly once (PyTorch layout: layer index leading)
    h_out_ref[0] = h0
    h_out_ref[1] = h1
    c_out_ref[0] = c0
    c_out_ref[1] = c1


# ------------------------------ Wrapper ------------------------------------ #

def encoder_forward(params, src):
    """src: (T, B) int32 tokens -> (output (T,B,H), hidden (2,B,H), cell (2,B,H))."""
    T, B = src.shape
    V, E = params["emb"].shape
    H = params["whh0"].shape[0]
    Bp = ((B + 7) // 8) * 8                      # pad batch to sublane multiple
    src_p = jnp.zeros((T, Bp), jnp.int32).at[:, :B].set(src)

    # Hoisted out of the recurrence (per perf review): embedding gather and
    # layer-0 input projection for ALL timesteps as one MXU-efficient matmul.
    # Dropout on the embedded input: identity (eval mode).
    emb_x = jnp.take(params["emb"], src_p.reshape(-1), axis=0)          # (T*Bp, E)
    xg = (emb_x @ params["wih0"] + params["b0"]).reshape(T, Bp, 4 * H)  # (T, Bp, 4H)

    w1 = jnp.concatenate([params["wih1"], params["whh1"]], axis=0)      # (2H, 4H)
    b1 = jnp.broadcast_to(params["b1"], (Bp, 4 * H))                    # (Bp, 4H)

    out, hid, cel = pl.pallas_call(
        _encoder_kernel,
        out_shape=(jax.ShapeDtypeStruct((T, Bp, H), jnp.float32),
                   jax.ShapeDtypeStruct((2, Bp, H), jnp.float32),
                   jax.ShapeDtypeStruct((2, Bp, H), jnp.float32)),
        grid=(1,),
        in_specs=[
            pl.BlockSpec((T, Bp, 4 * H), lambda i: (0, 0, 0)),   # hoisted gates input
            pl.BlockSpec((H, 4 * H), lambda i: (0, 0)),          # layer-0 W_hh^T
            pl.BlockSpec((2 * H, 4 * H), lambda i: (0, 0)),      # layer-1 fused weight
            pl.BlockSpec((Bp, 4 * H), lambda i: (0, 0)),         # layer-1 bias
        ],
        out_specs=(
            pl.BlockSpec((T, Bp, H), lambda i: (0, 0, 0)),       # encoder outputs
            pl.BlockSpec((2, Bp, H), lambda i: (0, 0, 0)),       # final hidden
            pl.BlockSpec((2, Bp, H), lambda i: (0, 0, 0)),       # final cell
        ),
        compiler_params=pltpu.CompilerParams(
            dimension_semantics=("arbitrary",),
            vmem_limit_bytes=32 * 1024 * 1024),
    )(xg, params["whh0"], w1, b1)

    return out[:, :B, :], hid[:, :B, :], cel[:, :B, :]


# -------------------------- Params & pure-JAX ref --------------------------- #

def init_params(key, vocab, emb, hidden):
    ks = jax.random.split(key, 7)
    s = 0.1
    p = {
        "emb":  jax.random.normal(ks[0], (vocab, emb)) * s,
        # layer 0 (input E -> hidden H), weights stored pre-transposed: (in, 4H)
        "wih0": jax.random.normal(ks[1], (emb, 4 * hidden)) * s,
        "whh0": jax.random.normal(ks[2], (hidden, 4 * hidden)) * s,
        "b0":   jax.random.normal(ks[3], (1, 4 * hidden)) * s,     # b_ih + b_hh combined
        # layer 1 (input H -> hidden H)
        "wih1": jax.random.normal(ks[4], (hidden, 4 * hidden)) * s,
        "whh1": jax.random.normal(ks[5], (hidden, 4 * hidden)) * s,
        "b1":   jax.random.normal(ks[6], (1, 4 * hidden)) * s,
    }
    return jax.tree_util.tree_map(lambda a: a.astype(jnp.float32), p)


def encoder_ref(params, src):
    """Pure-JAX reference (same math, no Pallas)."""
    T, B = src.shape
    H = params["whh0"].shape[0]

    def cell(x, h, c, wih, whh, b):
        g = x @ wih + h @ whh + b
        i = jax.nn.sigmoid(g[:, 0 * H:1 * H])
        f = jax.nn.sigmoid(g[:, 1 * H:2 * H])
        gg = jnp.tanh(g[:, 2 * H:3 * H])
        o = jax.nn.sigmoid(g[:, 3 * H:4 * H])
        c = f * c + i * gg
        h = o * jnp.tanh(c)
        return h, c

    h0 = jnp.zeros((B, H), jnp.float32); c0 = jnp.zeros((B, H), jnp.float32)
    h1 = jnp.zeros((B, H), jnp.float32); c1 = jnp.zeros((B, H), jnp.float32)
    outs = []
    for t in range(T):
        x = jnp.take(params["emb"], src[t], axis=0)
        h0, c0 = cell(x, h0, c0, params["wih0"], params["whh0"], params["b0"])
        h1, c1 = cell(h0, h1, c1, params["wih1"], params["whh1"], params["b1"])
        outs.append(h1)
    return (jnp.stack(outs, axis=0),
            jnp.stack([h0, h1], axis=0),
            jnp.stack([c0, c1], axis=0))


# --------------------------------- Main ------------------------------------ #

if __name__ == "__main__":
    VOCAB, EMB, HIDDEN = 64, 32, 32
    T_SRC, BATCH = 8, 4

    key = jax.random.PRNGKey(0)
    kp, ks = jax.random.split(key, 2)
    params = init_params(kp, VOCAB, EMB, HIDDEN)
    src = jax.random.randint(ks, (T_SRC, BATCH), 0, VOCAB, dtype=jnp.int32)

    fwd = jax.jit(encoder_forward)
    out, hidden, cell = fwd(params, src)
    out = jax.block_until_ready(out)
    hidden = jax.block_until_ready(hidden)
    cell = jax.block_until_ready(cell)

    assert out.shape == (T_SRC, BATCH, HIDDEN)
    assert hidden.shape == (2, BATCH, HIDDEN)
    assert cell.shape == (2, BATCH, HIDDEN)
    assert bool(jnp.all(jnp.isfinite(out)))
    assert bool(jnp.all(jnp.isfinite(hidden)))
    assert bool(jnp.all(jnp.isfinite(cell)))

    # numerical check against pure-JAX reference
    ro, rh, rc = encoder_ref(params, src)
    assert float(jnp.max(jnp.abs(out - ro))) < 5e-2
    assert float(jnp.max(jnp.abs(hidden - rh))) < 5e-2
    assert float(jnp.max(jnp.abs(cell - rc))) < 5e-2

    print("KERNEL_OK")
</pallas_src>

<mosaic_0001>
module attributes {stable_mosaic.version = 11 : i64} {
  func.func @_encoder_kernel(%arg0: i32, %arg1: memref<8x8x128xf32, #tpu.memory_space<vmem>>, %arg2: memref<32x128xf32, #tpu.memory_space<vmem>>, %arg3: memref<64x128xf32, #tpu.memory_space<vmem>>, %arg4: memref<8x128xf32, #tpu.memory_space<vmem>>, %arg5: memref<8x8x32xf32, #tpu.memory_space<vmem>>, %arg6: memref<2x8x32xf32, #tpu.memory_space<vmem>>, %arg7: memref<2x8x32xf32, #tpu.memory_space<vmem>>) attributes {dimension_semantics = [#tpu.dimension_semantics<arbitrary>], iteration_bounds = array<i64: 1>, scalar_prefetch = 0 : i64, scratch_operands = 0 : i64, tpu.core_type = #tpu.core_type<tc>, window_params = [{pipeline_mode = #tpu.pipeline_mode<synchronous>, transform_indices = @transform_0, window_bounds = array<i64: 8, 8, 128>}, {pipeline_mode = #tpu.pipeline_mode<synchronous>, transform_indices = @transform_1, window_bounds = array<i64: 32, 128>}, {pipeline_mode = #tpu.pipeline_mode<synchronous>, transform_indices = @transform_2, window_bounds = array<i64: 64, 128>}, {pipeline_mode = #tpu.pipeline_mode<synchronous>, transform_indices = @transform_3, window_bounds = array<i64: 8, 128>}, {pipeline_mode = #tpu.pipeline_mode<synchronous>, transform_indices = @transform_4, window_bounds = array<i64: 8, 8, 32>}, {pipeline_mode = #tpu.pipeline_mode<synchronous>, transform_indices = @transform_5, window_bounds = array<i64: 2, 8, 32>}, {pipeline_mode = #tpu.pipeline_mode<synchronous>, transform_indices = @transform_6, window_bounds = array<i64: 2, 8, 32>}]} {
    %0 = tpu.iota {dimensions = array<i32: 1>} : vector<8x128xi32>
    %c64_i32 = arith.constant 64 : i32
    %1 = vector.broadcast %c64_i32 : i32 to vector<8x128xi32>
    %2 = arith.cmpi sge, %0, %1 : vector<8x128xi32>
    %c96_i32 = arith.constant 96 : i32
    %3 = vector.broadcast %c96_i32 : i32 to vector<8x128xi32>
    %4 = arith.cmpi slt, %0, %3 : vector<8x128xi32>
    %5 = arith.andi %2, %4 : vector<8x128xi1>
    %cst = arith.constant 0.000000e+00 : f32
    %6 = vector.broadcast %cst : f32 to vector<8x32xf32>
    %c0_i32 = arith.constant 0 : i32
    %7 = arith.index_cast %c0_i32 : i32 to index
    %c0 = arith.constant 0 : index
    %c0_0 = arith.constant 0 : index
    %8 = vector.load %arg1[%7, %c0, %c0_0] : memref<8x8x128xf32, #tpu.memory_space<vmem>>, vector<1x8x128xf32>
    %9 = vector.shape_cast %8 : vector<1x8x128xf32> to vector<8x128xf32>
    %c0_1 = arith.constant 0 : index
    %c0_2 = arith.constant 0 : index
    %10 = vector.load %arg2[%c0_1, %c0_2] : memref<32x128xf32, #tpu.memory_space<vmem>>, vector<32x128xf32>
    %cst_3 = arith.constant dense<0.000000e+00> : vector<8x128xf32>
    %11 = tpu.matmul %6, %10, %cst_3 {dimension_numbers = #tpu.dot_dimension_numbers<[1], [0], [0], [1], [0, 0, 1, 1], [], []>} : vector<8x32xf32>, vector<32x128xf32>, vector<8x128xf32> -> vector<8x128xf32>
    %12 = arith.addf %9, %11 : vector<8x128xf32>
    %13 = math.tanh %12 : vector<8x128xf32>
    %14 = arith.negf %12 : vector<8x128xf32>
    %15 = math.exp %14 : vector<8x128xf32>
    %cst_4 = arith.constant 1.000000e+00 : f32
    %16 = vector.broadcast %cst_4 : f32 to vector<8x128xf32>
    %17 = arith.addf %16, %15 : vector<8x128xf32>
    %18 = arith.divf %16, %17 : vector<8x128xf32>
    %19 = arith.select %5, %13, %18 : vector<8x128xi1>, vector<8x128xf32>
    %20 = vector.extract_strided_slice %19 {offsets = [0, 0], sizes = [8, 32], strides = [1, 1]} : vector<8x128xf32> to vector<8x32xf32>
    %21 = vector.extract_strided_slice %19 {offsets = [0, 32], sizes = [8, 32], strides = [1, 1]} : vector<8x128xf32> to vector<8x32xf32>
    %22 = vector.extract_strided_slice %19 {offsets = [0, 64], sizes = [8, 32], strides = [1, 1]} : vector<8x128xf32> to vector<8x32xf32>
    %23 = vector.extract_strided_slice %19 {offsets = [0, 96], sizes = [8, 32], strides = [1, 1]} : vector<8x128xf32> to vector<8x32xf32>
    %24 = arith.mulf %21, %6 : vector<8x32xf32>
    %25 = arith.mulf %20, %22 : vector<8x32xf32>
    %26 = arith.addf %24, %25 : vector<8x32xf32>
    %27 = math.tanh %26 : vector<8x32xf32>
    %28 = arith.mulf %23, %27 : vector<8x32xf32>
    %29 = tpu.concatenate %28, %6 in 1 : vector<8x32xf32>, vector<8x32xf32> -> vector<8x64xf32>
    %c0_5 = arith.constant 0 : index
    %c0_6 = arith.constant 0 : index
    %30 = vector.load %arg3[%c0_5, %c0_6] : memref<64x128xf32, #tpu.memory_space<vmem>>, vector<64x128xf32>
    %cst_7 = arith.constant dense<0.000000e+00> : vector<8x128xf32>
    %31 = tpu.matmul %29, %30, %cst_7 {dimension_numbers = #tpu.dot_dimension_numbers<[1], [0], [0], [1], [0, 0, 1, 1], [], []>} : vector<8x64xf32>, vector<64x128xf32>, vector<8x128xf32> -> vector<8x128xf32>
    %c0_8 = arith.constant 0 : index
    %c0_9 = arith.constant 0 : index
    %32 = vector.load %arg4[%c0_8, %c0_9] : memref<8x128xf32, #tpu.memory_space<vmem>>, vector<8x128xf32>
    %33 = arith.addf %31, %32 : vector<8x128xf32>
    %34 = math.tanh %33 : vector<8x128xf32>
    %35 = arith.negf %33 : vector<8x128xf32>
    %36 = math.exp %35 : vector<8x128xf32>
    %cst_10 = arith.constant 1.000000e+00 : f32
    %37 = vector.broadcast %cst_10 : f32 to vector<8x128xf32>
    %38 = arith.addf %37, %36 : vector<8x128xf32>
    %39 = arith.divf %37, %38 : vector<8x128xf32>
    %40 = arith.select %5, %34, %39 : vector<8x128xi1>, vector<8x128xf32>
    %41 = vector.extract_strided_slice %40 {offsets = [0, 0], sizes = [8, 32], strides = [1, 1]} : vector<8x128xf32> to vector<8x32xf32>
    %42 = vector.extract_strided_slice %40 {offsets = [0, 32], sizes = [8, 32], strides = [1, 1]} : vector<8x128xf32> to vector<8x32xf32>
    %43 = vector.extract_strided_slice %40 {offsets = [0, 64], sizes = [8, 32], strides = [1, 1]} : vector<8x128xf32> to vector<8x32xf32>
    %44 = vector.extract_strided_slice %40 {offsets = [0, 96], sizes = [8, 32], strides = [1, 1]} : vector<8x128xf32> to vector<8x32xf32>
    %45 = arith.mulf %42, %6 : vector<8x32xf32>
    %46 = arith.mulf %41, %43 : vector<8x32xf32>
    %47 = arith.addf %45, %46 : vector<8x32xf32>
    %48 = math.tanh %47 : vector<8x32xf32>
    %49 = arith.mulf %44, %48 : vector<8x32xf32>
    %50 = arith.index_cast %c0_i32 : i32 to index
    %c0_11 = arith.constant 0 : index
    %c0_12 = arith.constant 0 : index
    %51 = vector.load %arg5[%50, %c0_11, %c0_12] : memref<8x8x32xf32, #tpu.memory_space<vmem>>, vector<1x8x32xf32>
    %52 = vector.shape_cast %51 : vector<1x8x32xf32> to vector<8x32xf32>
    %53 = vector.shape_cast %49 : vector<8x32xf32> to vector<1x8x32xf32>
    tpu.vector_store %arg5[%50, %c0_11, %c0_12], %53 {strides = array<i32>} : memref<8x8x32xf32, #tpu.memory_space<vmem>>, vector<1x8x32xf32>,
    %c1_i32 = arith.constant 1 : i32
    %54 = arith.index_cast %c1_i32 : i32 to index
    %c0_13 = arith.constant 0 : index
    %c0_14 = arith.constant 0 : index
    %55 = vector.load %arg1[%54, %c0_13, %c0_14] : memref<8x8x128xf32, #tpu.memory_space<vmem>>, vector<1x8x128xf32>
    %56 = vector.shape_cast %55 : vector<1x8x128xf32> to vector<8x128xf32>
    %c0_15 = arith.constant 0 : index
    %c0_16 = arith.constant 0 : index
    %57 = vector.load %arg2[%c0_15, %c0_16] : memref<32x128xf32, #tpu.memory_space<vmem>>, vector<32x128xf32>
    %cst_17 = arith.constant dense<0.000000e+00> : vector<8x128xf32>
    %58 = tpu.matmul %28, %57, %cst_17 {dimension_numbers = #tpu.dot_dimension_numbers<[1], [0], [0], [1], [0, 0, 1, 1], [], []>} : vector<8x32xf32>, vector<32x128xf32>, vector<8x128xf32> -> vector<8x128xf32>
    %59 = arith.addf %56, %58 : vector<8x128xf32>
    %60 = math.tanh %59 : vector<8x128xf32>
    %61 = arith.negf %59 : vector<8x128xf32>
    %62 = math.exp %61 : vector<8x128xf32>
    %cst_18 = arith.constant 1.000000e+00 : f32
    %63 = vector.broadcast %cst_18 : f32 to vector<8x128xf32>
    %64 = arith.addf %63, %62 : vector<8x128xf32>
    %65 = arith.divf %63, %64 : vector<8x128xf32>
    %66 = arith.select %5, %60, %65 : vector<8x128xi1>, vector<8x128xf32>
    %67 = vector.extract_strided_slice %66 {offsets = [0, 0], sizes = [8, 32], strides = [1, 1]} : vector<8x128xf32> to vector<8x32xf32>
    %68 = vector.extract_strided_slice %66 {offsets = [0, 32], sizes = [8, 32], strides = [1, 1]} : vector<8x128xf32> to vector<8x32xf32>
    %69 = vector.extract_strided_slice %66 {offsets = [0, 64], sizes = [8, 32], strides = [1, 1]} : vector<8x128xf32> to vector<8x32xf32>
    %70 = vector.extract_strided_slice %66 {offsets = [0, 96], sizes = [8, 32], strides = [1, 1]} : vector<8x128xf32> to vector<8x32xf32>
    %71 = arith.mulf %68, %26 : vector<8x32xf32>
    %72 = arith.mulf %67, %69 : vector<8x32xf32>
    %73 = arith.addf %71, %72 : vector<8x32xf32>
    %74 = math.tanh %73 : vector<8x32xf32>
    %75 = arith.mulf %70, %74 : vector<8x32xf32>
    %76 = tpu.concatenate %75, %49 in 1 : vector<8x32xf32>, vector<8x32xf32> -> vector<8x64xf32>
    %c0_19 = arith.constant 0 : index
    %c0_20 = arith.constant 0 : index
    %77 = vector.load %arg3[%c0_19, %c0_20] : memref<64x128xf32, #tpu.memory_space<vmem>>, vector<64x128xf32>
    %cst_21 = arith.constant dense<0.000000e+00> : vector<8x128xf32>
    %78 = tpu.matmul %76, %77, %cst_21 {dimension_numbers = #tpu.dot_dimension_numbers<[1], [0], [0], [1], [0, 0, 1, 1], [], []>} : vector<8x64xf32>, vector<64x128xf32>, vector<8x128xf32> -> vector<8x128xf32>
    %c0_22 = arith.constant 0 : index
    %c0_23 = arith.constant 0 : index
    %79 = vector.load %arg4[%c0_22, %c0_23] : memref<8x128xf32, #tpu.memory_space<vmem>>, vector<8x128xf32>
    %80 = arith.addf %78, %79 : vector<8x128xf32>
    %81 = math.tanh %80 : vector<8x128xf32>
    %82 = arith.negf %80 : vector<8x128xf32>
    %83 = math.exp %82 : vector<8x128xf32>
    %cst_24 = arith.constant 1.000000e+00 : f32
    %84 = vector.broadcast %cst_24 : f32 to vector<8x128xf32>
    %85 = arith.addf %84, %83 : vector<8x128xf32>
    %86 = arith.divf %84, %85 : vector<8x128xf32>
    %87 = arith.select %5, %81, %86 : vector<8x128xi1>, vector<8x128xf32>
    %88 = vector.extract_strided_slice %87 {offsets = [0, 0], sizes = [8, 32], strides = [1, 1]} : vector<8x128xf32> to vector<8x32xf32>
    %89 = vector.extract_strided_slice %87 {offsets = [0, 32], sizes = [8, 32], strides = [1, 1]} : vector<8x128xf32> to vector<8x32xf32>
    %90 = vector.extract_strided_slice %87 {offsets = [0, 64], sizes = [8, 32], strides = [1, 1]} : vector<8x128xf32> to vector<8x32xf32>
    %91 = vector.extract_strided_slice %87 {offsets = [0, 96], sizes = [8, 32], strides = [1, 1]} : vector<8x128xf32> to vector<8x32xf32>
    %92 = arith.mulf %89, %47 : vector<8x32xf32>
    %93 = arith.mulf %88, %90 : vector<8x32xf32>
    %94 = arith.addf %92, %93 : vector<8x32xf32>
    %95 = math.tanh %94 : vector<8x32xf32>
    %96 = arith.mulf %91, %95 : vector<8x32xf32>
    %97 = arith.index_cast %c1_i32 : i32 to index
    %c0_25 = arith.constant 0 : index
    %c0_26 = arith.constant 0 : index
    %98 = vector.load %arg5[%97, %c0_25, %c0_26] : memref<8x8x32xf32, #tpu.memory_space<vmem>>, vector<1x8x32xf32>
    %99 = vector.shape_cast %98 : vector<1x8x32xf32> to vector<8x32xf32>
    %100 = vector.shape_cast %96 : vector<8x32xf32> to vector<1x8x32xf32>
    tpu.vector_store %arg5[%97, %c0_25, %c0_26], %100 {strides = array<i32>} : memref<8x8x32xf32, #tpu.memory_space<vmem>>, vector<1x8x32xf32>,
    %c2_i32 = arith.constant 2 : i32
    %101 = arith.index_cast %c2_i32 : i32 to index
    %c0_27 = arith.constant 0 : index
    %c0_28 = arith.constant 0 : index
    %102 = vector.load %arg1[%101, %c0_27, %c0_28] : memref<8x8x128xf32, #tpu.memory_space<vmem>>, vector<1x8x128xf32>
    %103 = vector.shape_cast %102 : vector<1x8x128xf32> to vector<8x128xf32>
    %c0_29 = arith.constant 0 : index
    %c0_30 = arith.constant 0 : index
    %104 = vector.load %arg2[%c0_29, %c0_30] : memref<32x128xf32, #tpu.memory_space<vmem>>, vector<32x128xf32>
    %cst_31 = arith.constant dense<0.000000e+00> : vector<8x128xf32>
    %105 = tpu.matmul %75, %104, %cst_31 {dimension_numbers = #tpu.dot_dimension_numbers<[1], [0], [0], [1], [0, 0, 1, 1], [], []>} : vector<8x32xf32>, vector<32x128xf32>, vector<8x128xf32> -> vector<8x128xf32>
    %106 = arith.addf %103, %105 : vector<8x128xf32>
    %107 = math.tanh %106 : vector<8x128xf32>
    %108 = arith.negf %106 : vector<8x128xf32>
    %109 = math.exp %108 : vector<8x128xf32>
    %cst_32 = arith.constant 1.000000e+00 : f32
    %110 = vector.broadcast %cst_32 : f32 to vector<8x128xf32>
    %111 = arith.addf %110, %109 : vector<8x128xf32>
    %112 = arith.divf %110, %111 : vector<8x128xf32>
    %113 = arith.select %5, %107, %112 : vector<8x128xi1>, vector<8x128xf32>
    %114 = vector.extract_strided_slice %113 {offsets = [0, 0], sizes = [8, 32], strides = [1, 1]} : vector<8x128xf32> to vector<8x32xf32>
    %115 = vector.extract_strided_slice %113 {offsets = [0, 32], sizes = [8, 32], strides = [1, 1]} : vector<8x128xf32> to vector<8x32xf32>
    %116 = vector.extract_strided_slice %113 {offsets = [0, 64], sizes = [8, 32], strides = [1, 1]} : vector<8x128xf32> to vector<8x32xf32>
    %117 = vector.extract_strided_slice %113 {offsets = [0, 96], sizes = [8, 32], strides = [1, 1]} : vector<8x128xf32> to vector<8x32xf32>
    %118 = arith.mulf %115, %73 : vector<8x32xf32>
    %119 = arith.mulf %114, %116 : vector<8x32xf32>
    %120 = arith.addf %118, %119 : vector<8x32xf32>
    %121 = math.tanh %120 : vector<8x32xf32>
    %122 = arith.mulf %117, %121 : vector<8x32xf32>
    %123 = tpu.concatenate %122, %96 in 1 : vector<8x32xf32>, vector<8x32xf32> -> vector<8x64xf32>
    %c0_33 = arith.constant 0 : index
    %c0_34 = arith.constant 0 : index
    %124 = vector.load %arg3[%c0_33, %c0_34] : memref<64x128xf32, #tpu.memory_space<vmem>>, vector<64x128xf32>
    %cst_35 = arith.constant dense<0.000000e+00> : vector<8x128xf32>
    %125 = tpu.matmul %123, %124, %cst_35 {dimension_numbers = #tpu.dot_dimension_numbers<[1], [0], [0], [1], [0, 0, 1, 1], [], []>} : vector<8x64xf32>, vector<64x128xf32>, vector<8x128xf32> -> vector<8x128xf32>
    %c0_36 = arith.constant 0 : index
    %c0_37 = arith.constant 0 : index
    %126 = vector.load %arg4[%c0_36, %c0_37] : memref<8x128xf32, #tpu.memory_space<vmem>>, vector<8x128xf32>
    %127 = arith.addf %125, %126 : vector<8x128xf32>
    %128 = math.tanh %127 : vector<8x128xf32>
    %129 = arith.negf %127 : vector<8x128xf32>
    %130 = math.exp %129 : vector<8x128xf32>
    %cst_38 = arith.constant 1.000000e+00 : f32
    %131 = vector.broadcast %cst_38 : f32 to vector<8x128xf32>
    %132 = arith.addf %131, %130 : vector<8x128xf32>
    %133 = arith.divf %131, %132 : vector<8x128xf32>
    %134 = arith.select %5, %128, %133 : vector<8x128xi1>, vector<8x128xf32>
    %135 = vector.extract_strided_slice %134 {offsets = [0, 0], sizes = [8, 32], strides = [1, 1]} : vector<8x128xf32> to vector<8x32xf32>
    %136 = vector.extract_strided_slice %134 {offsets = [0, 32], sizes = [8, 32], strides = [1, 1]} : vector<8x128xf32> to vector<8x32xf32>
    %137 = vector.extract_strided_slice %134 {offsets = [0, 64], sizes = [8, 32], strides = [1, 1]} : vector<8x128xf32> to vector<8x32xf32>
    %138 = vector.extract_strided_slice %134 {offsets = [0, 96], sizes = [8, 32], strides = [1, 1]} : vector<8x128xf32> to vector<8x32xf32>
    %139 = arith.mulf %136, %94 : vector<8x32xf32>
    %140 = arith.mulf %135, %137 : vector<8x32xf32>
    %141 = arith.addf %139, %140 : vector<8x32xf32>
    %142 = math.tanh %141 : vector<8x32xf32>
    %143 = arith.mulf %138, %142 : vector<8x32xf32>
    %144 = arith.index_cast %c2_i32 : i32 to index
    %c0_39 = arith.constant 0 : index
    %c0_40 = arith.constant 0 : index
    %145 = vector.load %arg5[%144, %c0_39, %c0_40] : memref<8x8x32xf32, #tpu.memory_space<vmem>>, vector<1x8x32xf32>
    %146 = vector.shape_cast %145 : vector<1x8x32xf32> to vector<8x32xf32>
    %147 = vector.shape_cast %143 : vector<8x32xf32> to vector<1x8x32xf32>
    tpu.vector_store %arg5[%144, %c0_39, %c0_40], %147 {strides = array<i32>} : memref<8x8x32xf32, #tpu.memory_space<vmem>>, vector<1x8x32xf32>,
    %c3_i32 = arith.constant 3 : i32
    %148 = arith.index_cast %c3_i32 : i32 to index
    %c0_41 = arith.constant 0 : index
    %c0_42 = arith.constant 0 : index
    %149 = vector.load %arg1[%148, %c0_41, %c0_42] : memref<8x8x128xf32, #tpu.memory_space<vmem>>, vector<1x8x128xf32>
    %150 = vector.shape_cast %149 : vector<1x8x128xf32> to vector<8x128xf32>
    %c0_43 = arith.constant 0 : index
    %c0_44 = arith.constant 0 : index
    %151 = vector.load %arg2[%c0_43, %c0_44] : memref<32x128xf32, #tpu.memory_space<vmem>>, vector<32x128xf32>
    %cst_45 = arith.constant dense<0.000000e+00> : vector<8x128xf32>
    %152 = tpu.matmul %122, %151, %cst_45 {dimension_numbers = #tpu.dot_dimension_numbers<[1], [0], [0], [1], [0, 0, 1, 1], [], []>} : vector<8x32xf32>, vector<32x128xf32>, vector<8x128xf32> -> vector<8x128xf32>
    %153 = arith.addf %150, %152 : vector<8x128xf32>
    %154 = math.tanh %153 : vector<8x128xf32>
    %155 = arith.negf %153 : vector<8x128xf32>
    %156 = math.exp %155 : vector<8x128xf32>
    %cst_46 = arith.constant 1.000000e+00 : f32
    %157 = vector.broadcast %cst_46 : f32 to vector<8x128xf32>
    %158 = arith.addf %157, %156 : vector<8x128xf32>
    %159 = arith.divf %157, %158 : vector<8x128xf32>
    %160 = arith.select %5, %154, %159 : vector<8x128xi1>, vector<8x128xf32>
    %161 = vector.extract_strided_slice %160 {offsets = [0, 0], sizes = [8, 32], strides = [1, 1]} : vector<8x128xf32> to vector<8x32xf32>
    %162 = vector.extract_strided_slice %160 {offsets = [0, 32], sizes = [8, 32], strides = [1, 1]} : vector<8x128xf32> to vector<8x32xf32>
    %163 = vector.extract_strided_slice %160 {offsets = [0, 64], sizes = [8, 32], strides = [1, 1]} : vector<8x128xf32> to vector<8x32xf32>
    %164 = vector.extract_strided_slice %160 {offsets = [0, 96], sizes = [8, 32], strides = [1, 1]} : vector<8x128xf32> to vector<8x32xf32>
    %165 = arith.mulf %162, %120 : vector<8x32xf32>
    %166 = arith.mulf %161, %163 : vector<8x32xf32>
    %167 = arith.addf %165, %166 : vector<8x32xf32>
    %168 = math.tanh %167 : vector<8x32xf32>
    %169 = arith.mulf %164, %168 : vector<8x32xf32>
    %170 = tpu.concatenate %169, %143 in 1 : vector<8x32xf32>, vector<8x32xf32> -> vector<8x64xf32>
    %c0_47 = arith.constant 0 : index
    %c0_48 = arith.constant 0 : index
    %171 = vector.load %arg3[%c0_47, %c0_48] : memref<64x128xf32, #tpu.memory_space<vmem>>, vector<64x128xf32>
    %cst_49 = arith.constant dense<0.000000e+00> : vector<8x128xf32>
    %172 = tpu.matmul %170, %171, %cst_49 {dimension_numbers = #tpu.dot_dimension_numbers<[1], [0], [0], [1], [0, 0, 1, 1], [], []>} : vector<8x64xf32>, vector<64x128xf32>, vector<8x128xf32> -> vector<8x128xf32>
    %c0_50 = arith.constant 0 : index
    %c0_51 = arith.constant 0 : index
    %173 = vector.load %arg4[%c0_50, %c0_51] : memref<8x128xf32, #tpu.memory_space<vmem>>, vector<8x128xf32>
    %174 = arith.addf %172, %173 : vector<8x128xf32>
    %175 = math.tanh %174 : vector<8x128xf32>
    %176 = arith.negf %174 : vector<8x128xf32>
    %177 = math.exp %176 : vector<8x128xf32>
    %cst_52 = arith.constant 1.000000e+00 : f32
    %178 = vector.broadcast %cst_52 : f32 to vector<8x128xf32>
    %179 = arith.addf %178, %177 : vector<8x128xf32>
    %180 = arith.divf %178, %179 : vector<8x128xf32>
    %181 = arith.select %5, %175, %180 : vector<8x128xi1>, vector<8x128xf32>
    %182 = vector.extract_strided_slice %181 {offsets = [0, 0], sizes = [8, 32], strides = [1, 1]} : vector<8x128xf32> to vector<8x32xf32>
    %183 = vector.extract_strided_slice %181 {offsets = [0, 32], sizes = [8, 32], strides = [1, 1]} : vector<8x128xf32> to vector<8x32xf32>
    %184 = vector.extract_strided_slice %181 {offsets = [0, 64], sizes = [8, 32], strides = [1, 1]} : vector<8x128xf32> to vector<8x32xf32>
    %185 = vector.extract_strided_slice %181 {offsets = [0, 96], sizes = [8, 32], strides = [1, 1]} : vector<8x128xf32> to vector<8x32xf32>
    %186 = arith.mulf %183, %141 : vector<8x32xf32>
    %187 = arith.mulf %182, %184 : vector<8x32xf32>
    %188 = arith.addf %186, %187 : vector<8x32xf32>
    %189 = math.tanh %188 : vector<8x32xf32>
    %190 = arith.mulf %185, %189 : vector<8x32xf32>
    %191 = arith.index_cast %c3_i32 : i32 to index
    %c0_53 = arith.constant 0 : index
    %c0_54 = arith.constant 0 : index
    %192 = vector.load %arg5[%191, %c0_53, %c0_54] : memref<8x8x32xf32, #tpu.memory_space<vmem>>, vector<1x8x32xf32>
    %193 = vector.shape_cast %192 : vector<1x8x32xf32> to vector<8x32xf32>
    %194 = vector.shape_cast %190 : vector<8x32xf32> to vector<1x8x32xf32>
    tpu.vector_store %arg5[%191, %c0_53, %c0_54], %194 {strides = array<i32>} : memref<8x8x32xf32, #tpu.memory_space<vmem>>, vector<1x8x32xf32>,
    %c4_i32 = arith.constant 4 : i32
    %195 = arith.index_cast %c4_i32 : i32 to index
    %c0_55 = arith.constant 0 : index
    %c0_56 = arith.constant 0 : index
    %196 = vector.load %arg1[%195, %c0_55, %c0_56] : memref<8x8x128xf32, #tpu.memory_space<vmem>>, vector<1x8x128xf32>
    %197 = vector.shape_cast %196 : vector<1x8x128xf32> to vector<8x128xf32>
    %c0_57 = arith.constant 0 : index
    %c0_58 = arith.constant 0 : index
    %198 = vector.load %arg2[%c0_57, %c0_58] : memref<32x128xf32, #tpu.memory_space<vmem>>, vector<32x128xf32>
    %cst_59 = arith.constant dense<0.000000e+00> : vector<8x128xf32>
    %199 = tpu.matmul %169, %198, %cst_59 {dimension_numbers = #tpu.dot_dimension_numbers<[1], [0], [0], [1], [0, 0, 1, 1], [], []>} : vector<8x32xf32>, vector<32x128xf32>, vector<8x128xf32> -> vector<8x128xf32>
    %200 = arith.addf %197, %199 : vector<8x128xf32>
    %201 = math.tanh %200 : vector<8x128xf32>
    %202 = arith.negf %200 : vector<8x128xf32>
    %203 = math.exp %202 : vector<8x128xf32>
    %cst_60 = arith.constant 1.000000e+00 : f32
    %204 = vector.broadcast %cst_60 : f32 to vector<8x128xf32>
    %205 = arith.addf %204, %203 : vector<8x128xf32>
    %206 = arith.divf %204, %205 : vector<8x128xf32>
    %207 = arith.select %5, %201, %206 : vector<8x128xi1>, vector<8x128xf32>
    %208 = vector.extract_strided_slice %207 {offsets = [0, 0], sizes = [8, 32], strides = [1, 1]} : vector<8x128xf32> to vector<8x32xf32>
    %209 = vector.extract_strided_slice %207 {offsets = [0, 32], sizes = [8, 32], strides = [1, 1]} : vector<8x128xf32> to vector<8x32xf32>
    %210 = vector.extract_strided_slice %207 {offsets = [0, 64], sizes = [8, 32], strides = [1, 1]} : vector<8x128xf32> to vector<8x32xf32>
    %211 = vector.extract_strided_slice %207 {offsets = [0, 96], sizes = [8, 32], strides = [1, 1]} : vector<8x128xf32> to vector<8x32xf32>
    %212 = arith.mulf %209, %167 : vector<8x32xf32>
    %213 = arith.mulf %208, %210 : vector<8x32xf32>
    %214 = arith.addf %212, %213 : vector<8x32xf32>
    %215 = math.tanh %214 : vector<8x32xf32>
    %216 = arith.mulf %211, %215 : vector<8x32xf32>
    %217 = tpu.concatenate %216, %190 in 1 : vector<8x32xf32>, vector<8x32xf32> -> vector<8x64xf32>
    %c0_61 = arith.constant 0 : index
    %c0_62 = arith.constant 0 : index
    %218 = vector.load %arg3[%c0_61, %c0_62] : memref<64x128xf32, #tpu.memory_space<vmem>>, vector<64x128xf32>
    %cst_63 = arith.constant dense<0.000000e+00> : vector<8x128xf32>
    %219 = tpu.matmul %217, %218, %cst_63 {dimension_numbers = #tpu.dot_dimension_numbers<[1], [0], [0], [1], [0, 0, 1, 1], [], []>} : vector<8x64xf32>, vector<64x128xf32>, vector<8x128xf32> -> vector<8x128xf32>
    %c0_64 = arith.constant 0 : index
    %c0_65 = arith.constant 0 : index
    %220 = vector.load %arg4[%c0_64, %c0_65] : memref<8x128xf32, #tpu.memory_space<vmem>>, vector<8x128xf32>
    %221 = arith.addf %219, %220 : vector<8x128xf32>
    %222 = math.tanh %221 : vector<8x128xf32>
    %223 = arith.negf %221 : vector<8x128xf32>
    %224 = math.exp %223 : vector<8x128xf32>
    %cst_66 = arith.constant 1.000000e+00 : f32
    %225 = vector.broadcast %cst_66 : f32 to vector<8x128xf32>
    %226 = arith.addf %225, %224 : vector<8x128xf32>
    %227 = arith.divf %225, %226 : vector<8x128xf32>
    %228 = arith.select %5, %222, %227 : vector<8x128xi1>, vector<8x128xf32>
    %229 = vector.extract_strided_slice %228 {offsets = [0, 0], sizes = [8, 32], strides = [1, 1]} : vector<8x128xf32> to vector<8x32xf32>
    %230 = vector.extract_strided_slice %228 {offsets = [0, 32], sizes = [8, 32], strides = [1, 1]} : vector<8x128xf32> to vector<8x32xf32>
    %231 = vector.extract_strided_slice %228 {offsets = [0, 64], sizes = [8, 32], strides = [1, 1]} : vector<8x128xf32> to vector<8x32xf32>
    %232 = vector.extract_strided_slice %228 {offsets = [0, 96], sizes = [8, 32], strides = [1, 1]} : vector<8x128xf32> to vector<8x32xf32>
    %233 = arith.mulf %230, %188 : vector<8x32xf32>
    %234 = arith.mulf %229, %231 : vector<8x32xf32>
    %235 = arith.addf %233, %234 : vector<8x32xf32>
    %236 = math.tanh %235 : vector<8x32xf32>
    %237 = arith.mulf %232, %236 : vector<8x32xf32>
    %238 = arith.index_cast %c4_i32 : i32 to index
    %c0_67 = arith.constant 0 : index
    %c0_68 = arith.constant 0 : index
    %239 = vector.load %arg5[%238, %c0_67, %c0_68] : memref<8x8x32xf32, #tpu.memory_space<vmem>>, vector<1x8x32xf32>
    %240 = vector.shape_cast %239 : vector<1x8x32xf32> to vector<8x32xf32>
    %241 = vector.shape_cast %237 : vector<8x32xf32> to vector<1x8x32xf32>
    tpu.vector_store %arg5[%238, %c0_67, %c0_68], %241 {strides = array<i32>} : memref<8x8x32xf32, #tpu.memory_space<vmem>>, vector<1x8x32xf32>,
    %c5_i32 = arith.constant 5 : i32
    %242 = arith.index_cast %c5_i32 : i32 to index
    %c0_69 = arith.constant 0 : index
    %c0_70 = arith.constant 0 : index
    %243 = vector.load %arg1[%242, %c0_69, %c0_70] : memref<8x8x128xf32, #tpu.memory_space<vmem>>, vector<1x8x128xf32>
    %244 = vector.shape_cast %243 : vector<1x8x128xf32> to vector<8x128xf32>
    %c0_71 = arith.constant 0 : index
    %c0_72 = arith.constant 0 : index
    %245 = vector.load %arg2[%c0_71, %c0_72] : memref<32x128xf32, #tpu.memory_space<vmem>>, vector<32x128xf32>
    %cst_73 = arith.constant dense<0.000000e+00> : vector<8x128xf32>
    %246 = tpu.matmul %216, %245, %cst_73 {dimension_numbers = #tpu.dot_dimension_numbers<[1], [0], [0], [1], [0, 0, 1, 1], [], []>} : vector<8x32xf32>, vector<32x128xf32>, vector<8x128xf32> -> vector<8x128xf32>
    %247 = arith.addf %244, %246 : vector<8x128xf32>
    %248 = math.tanh %247 : vector<8x128xf32>
    %249 = arith.negf %247 : vector<8x128xf32>
    %250 = math.exp %249 : vector<8x128xf32>
    %cst_74 = arith.constant 1.000000e+00 : f32
    %251 = vector.broadcast %cst_74 : f32 to vector<8x128xf32>
    %252 = arith.addf %251, %250 : vector<8x128xf32>
    %253 = arith.divf %251, %252 : vector<8x128xf32>
    %254 = arith.select %5, %248, %253 : vector<8x128xi1>, vector<8x128xf32>
    %255 = vector.extract_strided_slice %254 {offsets = [0, 0], sizes = [8, 32], strides = [1, 1]} : vector<8x128xf32> to vector<8x32xf32>
    %256 = vector.extract_strided_slice %254 {offsets = [0, 32], sizes = [8, 32], strides = [1, 1]} : vector<8x128xf32> to vector<8x32xf32>
    %257 = vector.extract_strided_slice %254 {offsets = [0, 64], sizes = [8, 32], strides = [1, 1]} : vector<8x128xf32> to vector<8x32xf32>
    %258 = vector.extract_strided_slice %254 {offsets = [0, 96], sizes = [8, 32], strides = [1, 1]} : vector<8x128xf32> to vector<8x32xf32>
    %259 = arith.mulf %256, %214 : vector<8x32xf32>
    %260 = arith.mulf %255, %257 : vector<8x32xf32>
    %261 = arith.addf %259, %260 : vector<8x32xf32>
    %262 = math.tanh %261 : vector<8x32xf32>
    %263 = arith.mulf %258, %262 : vector<8x32xf32>
    %264 = tpu.concatenate %263, %237 in 1 : vector<8x32xf32>, vector<8x32xf32> -> vector<8x64xf32>
    %c0_75 = arith.constant 0 : index
    %c0_76 = arith.constant 0 : index
    %265 = vector.load %arg3[%c0_75, %c0_76] : memref<64x128xf32, #tpu.memory_space<vmem>>, vector<64x128xf32>
    %cst_77 = arith.constant dense<0.000000e+00> : vector<8x128xf32>
    %266 = tpu.matmul %264, %265, %cst_77 {dimension_numbers = #tpu.dot_dimension_numbers<[1], [0], [0], [1], [0, 0, 1, 1], [], []>} : vector<8x64xf32>, vector<64x128xf32>, vector<8x128xf32> -> vector<8x128xf32>
    %c0_78 = arith.constant 0 : index
    %c0_79 = arith.constant 0 : index
    %267 = vector.load %arg4[%c0_78, %c0_79] : memref<8x128xf32, #tpu.memory_space<vmem>>, vector<8x128xf32>
    %268 = arith.addf %266, %267 : vector<8x128xf32>
    %269 = math.tanh %268 : vector<8x128xf32>
    %270 = arith.negf %268 : vector<8x128xf32>
    %271 = math.exp %270 : vector<8x128xf32>
    %cst_80 = arith.constant 1.000000e+00 : f32
    %272 = vector.broadcast %cst_80 : f32 to vector<8x128xf32>
    %273 = arith.addf %272, %271 : vector<8x128xf32>
    %274 = arith.divf %272, %273 : vector<8x128xf32>
    %275 = arith.select %5, %269, %274 : vector<8x128xi1>, vector<8x128xf32>
    %276 = vector.extract_strided_slice %275 {offsets = [0, 0], sizes = [8, 32], strides = [1, 1]} : vector<8x128xf32> to vector<8x32xf32>
    %277 = vector.extract_strided_slice %275 {offsets = [0, 32], sizes = [8, 32], strides = [1, 1]} : vector<8x128xf32> to vector<8x32xf32>
    %278 = vector.extract_strided_slice %275 {offsets = [0, 64], sizes = [8, 32], strides = [1, 1]} : vector<8x128xf32> to vector<8x32xf32>
    %279 = vector.extract_strided_slice %275 {offsets = [0, 96], sizes = [8, 32], strides = [1, 1]} : vector<8x128xf32> to vector<8x32xf32>
    %280 = arith.mulf %277, %235 : vector<8x32xf32>
    %281 = arith.mulf %276, %278 : vector<8x32xf32>
    %282 = arith.addf %280, %281 : vector<8x32xf32>
    %283 = math.tanh %282 : vector<8x32xf32>
    %284 = arith.mulf %279, %283 : vector<8x32xf32>
    %285 = arith.index_cast %c5_i32 : i32 to index
    %c0_81 = arith.constant 0 : index
    %c0_82 = arith.constant 0 : index
    %286 = vector.load %arg5[%285, %c0_81, %c0_82] : memref<8x8x32xf32, #tpu.memory_space<vmem>>, vector<1x8x32xf32>
    %287 = vector.shape_cast %286 : vector<1x8x32xf32> to vector<8x32xf32>
    %288 = vector.shape_cast %284 : vector<8x32xf32> to vector<1x8x32xf32>
    tpu.vector_store %arg5[%285, %c0_81, %c0_82], %288 {strides = array<i32>} : memref<8x8x32xf32, #tpu.memory_space<vmem>>, vector<1x8x32xf32>,
    %c6_i32 = arith.constant 6 : i32
    %289 = arith.index_cast %c6_i32 : i32 to index
    %c0_83 = arith.constant 0 : index
    %c0_84 = arith.constant 0 : index
    %290 = vector.load %arg1[%289, %c0_83, %c0_84] : memref<8x8x128xf32, #tpu.memory_space<vmem>>, vector<1x8x128xf32>
    %291 = vector.shape_cast %290 : vector<1x8x128xf32> to vector<8x128xf32>
    %c0_85 = arith.constant 0 : index
    %c0_86 = arith.constant 0 : index
    %292 = vector.load %arg2[%c0_85, %c0_86] : memref<32x128xf32, #tpu.memory_space<vmem>>, vector<32x128xf32>
    %cst_87 = arith.constant dense<0.000000e+00> : vector<8x128xf32>
    %293 = tpu.matmul %263, %292, %cst_87 {dimension_numbers = #tpu.dot_dimension_numbers<[1], [0], [0], [1], [0, 0, 1, 1], [], []>} : vector<8x32xf32>, vector<32x128xf32>, vector<8x128xf32> -> vector<8x128xf32>
    %294 = arith.addf %291, %293 : vector<8x128xf32>
    %295 = math.tanh %294 : vector<8x128xf32>
    %296 = arith.negf %294 : vector<8x128xf32>
    %297 = math.exp %296 : vector<8x128xf32>
    %cst_88 = arith.constant 1.000000e+00 : f32
    %298 = vector.broadcast %cst_88 : f32 to vector<8x128xf32>
    %299 = arith.addf %298, %297 : vector<8x128xf32>
    %300 = arith.divf %298, %299 : vector<8x128xf32>
    %301 = arith.select %5, %295, %300 : vector<8x128xi1>, vector<8x128xf32>
    %302 = vector.extract_strided_slice %301 {offsets = [0, 0], sizes = [8, 32], strides = [1, 1]} : vector<8x128xf32> to vector<8x32xf32>
    %303 = vector.extract_strided_slice %301 {offsets = [0, 32], sizes = [8, 32], strides = [1, 1]} : vector<8x128xf32> to vector<8x32xf32>
    %304 = vector.extract_strided_slice %301 {offsets = [0, 64], sizes = [8, 32], strides = [1, 1]} : vector<8x128xf32> to vector<8x32xf32>
    %305 = vector.extract_strided_slice %301 {offsets = [0, 96], sizes = [8, 32], strides = [1, 1]} : vector<8x128xf32> to vector<8x32xf32>
    %306 = arith.mulf %303, %261 : vector<8x32xf32>
    %307 = arith.mulf %302, %304 : vector<8x32xf32>
    %308 = arith.addf %306, %307 : vector<8x32xf32>
    %309 = math.tanh %308 : vector<8x32xf32>
    %310 = arith.mulf %305, %309 : vector<8x32xf32>
    %311 = tpu.concatenate %310, %284 in 1 : vector<8x32xf32>, vector<8x32xf32> -> vector<8x64xf32>
    %c0_89 = arith.constant 0 : index
    %c0_90 = arith.constant 0 : index
    %312 = vector.load %arg3[%c0_89, %c0_90] : memref<64x128xf32, #tpu.memory_space<vmem>>, vector<64x128xf32>
    %cst_91 = arith.constant dense<0.000000e+00> : vector<8x128xf32>
    %313 = tpu.matmul %311, %312, %cst_91 {dimension_numbers = #tpu.dot_dimension_numbers<[1], [0], [0], [1], [0, 0, 1, 1], [], []>} : vector<8x64xf32>, vector<64x128xf32>, vector<8x128xf32> -> vector<8x128xf32>
    %c0_92 = arith.constant 0 : index
    %c0_93 = arith.constant 0 : index
    %314 = vector.load %arg4[%c0_92, %c0_93] : memref<8x128xf32, #tpu.memory_space<vmem>>, vector<8x128xf32>
    %315 = arith.addf %313, %314 : vector<8x128xf32>
    %316 = math.tanh %315 : vector<8x128xf32>
    %317 = arith.negf %315 : vector<8x128xf32>
    %318 = math.exp %317 : vector<8x128xf32>
    %cst_94 = arith.constant 1.000000e+00 : f32
    %319 = vector.broadcast %cst_94 : f32 to vector<8x128xf32>
    %320 = arith.addf %319, %318 : vector<8x128xf32>
    %321 = arith.divf %319, %320 : vector<8x128xf32>
    %322 = arith.select %5, %316, %321 : vector<8x128xi1>, vector<8x128xf32>
    %323 = vector.extract_strided_slice %322 {offsets = [0, 0], sizes = [8, 32], strides = [1, 1]} : vector<8x128xf32> to vector<8x32xf32>
    %324 = vector.extract_strided_slice %322 {offsets = [0, 32], sizes = [8, 32], strides = [1, 1]} : vector<8x128xf32> to vector<8x32xf32>
    %325 = vector.extract_strided_slice %322 {offsets = [0, 64], sizes = [8, 32], strides = [1, 1]} : vector<8x128xf32> to vector<8x32xf32>
    %326 = vector.extract_strided_slice %322 {offsets = [0, 96], sizes = [8, 32], strides = [1, 1]} : vector<8x128xf32> to vector<8x32xf32>
    %327 = arith.mulf %324, %282 : vector<8x32xf32>
    %328 = arith.mulf %323, %325 : vector<8x32xf32>
    %329 = arith.addf %327, %328 : vector<8x32xf32>
    %330 = math.tanh %329 : vector<8x32xf32>
    %331 = arith.mulf %326, %330 : vector<8x32xf32>
    %332 = arith.index_cast %c6_i32 : i32 to index
    %c0_95 = arith.constant 0 : index
    %c0_96 = arith.constant 0 : index
    %333 = vector.load %arg5[%332, %c0_95, %c0_96] : memref<8x8x32xf32, #tpu.memory_space<vmem>>, vector<1x8x32xf32>
    %334 = vector.shape_cast %333 : vector<1x8x32xf32> to vector<8x32xf32>
    %335 = vector.shape_cast %331 : vector<8x32xf32> to vector<1x8x32xf32>
    tpu.vector_store %arg5[%332, %c0_95, %c0_96], %335 {strides = array<i32>} : memref<8x8x32xf32, #tpu.memory_space<vmem>>, vector<1x8x32xf32>,
    %c7_i32 = arith.constant 7 : i32
    %336 = arith.index_cast %c7_i32 : i32 to index
    %c0_97 = arith.constant 0 : index
    %c0_98 = arith.constant 0 : index
    %337 = vector.load %arg1[%336, %c0_97, %c0_98] : memref<8x8x128xf32, #tpu.memory_space<vmem>>, vector<1x8x128xf32>
    %338 = vector.shape_cast %337 : vector<1x8x128xf32> to vector<8x128xf32>
    %c0_99 = arith.constant 0 : index
    %c0_100 = arith.constant 0 : index
    %339 = vector.load %arg2[%c0_99, %c0_100] : memref<32x128xf32, #tpu.memory_space<vmem>>, vector<32x128xf32>
    %cst_101 = arith.constant dense<0.000000e+00> : vector<8x128xf32>
    %340 = tpu.matmul %310, %339, %cst_101 {dimension_numbers = #tpu.dot_dimension_numbers<[1], [0], [0], [1], [0, 0, 1, 1], [], []>} : vector<8x32xf32>, vector<32x128xf32>, vector<8x128xf32> -> vector<8x128xf32>
    %341 = arith.addf %338, %340 : vector<8x128xf32>
    %342 = math.tanh %341 : vector<8x128xf32>
    %343 = arith.negf %341 : vector<8x128xf32>
    %344 = math.exp %343 : vector<8x128xf32>
    %cst_102 = arith.constant 1.000000e+00 : f32
    %345 = vector.broadcast %cst_102 : f32 to vector<8x128xf32>
    %346 = arith.addf %345, %344 : vector<8x128xf32>
    %347 = arith.divf %345, %346 : vector<8x128xf32>
    %348 = arith.select %5, %342, %347 : vector<8x128xi1>, vector<8x128xf32>
    %349 = vector.extract_strided_slice %348 {offsets = [0, 0], sizes = [8, 32], strides = [1, 1]} : vector<8x128xf32> to vector<8x32xf32>
    %350 = vector.extract_strided_slice %348 {offsets = [0, 32], sizes = [8, 32], strides = [1, 1]} : vector<8x128xf32> to vector<8x32xf32>
    %351 = vector.extract_strided_slice %348 {offsets = [0, 64], sizes = [8, 32], strides = [1, 1]} : vector<8x128xf32> to vector<8x32xf32>
    %352 = vector.extract_strided_slice %348 {offsets = [0, 96], sizes = [8, 32], strides = [1, 1]} : vector<8x128xf32> to vector<8x32xf32>
    %353 = arith.mulf %350, %308 : vector<8x32xf32>
    %354 = arith.mulf %349, %351 : vector<8x32xf32>
    %355 = arith.addf %353, %354 : vector<8x32xf32>
    %356 = math.tanh %355 : vector<8x32xf32>
    %357 = arith.mulf %352, %356 : vector<8x32xf32>
    %358 = tpu.concatenate %357, %331 in 1 : vector<8x32xf32>, vector<8x32xf32> -> vector<8x64xf32>
    %c0_103 = arith.constant 0 : index
    %c0_104 = arith.constant 0 : index
    %359 = vector.load %arg3[%c0_103, %c0_104] : memref<64x128xf32, #tpu.memory_space<vmem>>, vector<64x128xf32>
    %cst_105 = arith.constant dense<0.000000e+00> : vector<8x128xf32>
    %360 = tpu.matmul %358, %359, %cst_105 {dimension_numbers = #tpu.dot_dimension_numbers<[1], [0], [0], [1], [0, 0, 1, 1], [], []>} : vector<8x64xf32>, vector<64x128xf32>, vector<8x128xf32> -> vector<8x128xf32>
    %c0_106 = arith.constant 0 : index
    %c0_107 = arith.constant 0 : index
    %361 = vector.load %arg4[%c0_106, %c0_107] : memref<8x128xf32, #tpu.memory_space<vmem>>, vector<8x128xf32>
    %362 = arith.addf %360, %361 : vector<8x128xf32>
    %363 = math.tanh %362 : vector<8x128xf32>
    %364 = arith.negf %362 : vector<8x128xf32>
    %365 = math.exp %364 : vector<8x128xf32>
    %cst_108 = arith.constant 1.000000e+00 : f32
    %366 = vector.broadcast %cst_108 : f32 to vector<8x128xf32>
    %367 = arith.addf %366, %365 : vector<8x128xf32>
    %368 = arith.divf %366, %367 : vector<8x128xf32>
    %369 = arith.select %5, %363, %368 : vector<8x128xi1>, vector<8x128xf32>
    %370 = vector.extract_strided_slice %369 {offsets = [0, 0], sizes = [8, 32], strides = [1, 1]} : vector<8x128xf32> to vector<8x32xf32>
    %371 = vector.extract_strided_slice %369 {offsets = [0, 32], sizes = [8, 32], strides = [1, 1]} : vector<8x128xf32> to vector<8x32xf32>
    %372 = vector.extract_strided_slice %369 {offsets = [0, 64], sizes = [8, 32], strides = [1, 1]} : vector<8x128xf32> to vector<8x32xf32>
    %373 = vector.extract_strided_slice %369 {offsets = [0, 96], sizes = [8, 32], strides = [1, 1]} : vector<8x128xf32> to vector<8x32xf32>
    %374 = arith.mulf %371, %329 : vector<8x32xf32>
    %375 = arith.mulf %370, %372 : vector<8x32xf32>
    %376 = arith.addf %374, %375 : vector<8x32xf32>
    %377 = math.tanh %376 : vector<8x32xf32>
    %378 = arith.mulf %373, %377 : vector<8x32xf32>
    %379 = arith.index_cast %c7_i32 : i32 to index
    %c0_109 = arith.constant 0 : index
    %c0_110 = arith.constant 0 : index
    %380 = vector.load %arg5[%379, %c0_109, %c0_110] : memref<8x8x32xf32, #tpu.memory_space<vmem>>, vector<1x8x32xf32>
    %381 = vector.shape_cast %380 : vector<1x8x32xf32> to vector<8x32xf32>
    %382 = vector.shape_cast %378 : vector<8x32xf32> to vector<1x8x32xf32>
    tpu.vector_store %arg5[%379, %c0_109, %c0_110], %382 {strides = array<i32>} : memref<8x8x32xf32, #tpu.memory_space<vmem>>, vector<1x8x32xf32>,
    %c8_i32 = arith.constant 8 : i32
    %c0_111 = arith.constant 0 : index
    %c0_112 = arith.constant 0 : index
    %c0_113 = arith.constant 0 : index
    %383 = vector.load %arg6[%c0_111, %c0_112, %c0_113] : memref<2x8x32xf32, #tpu.memory_space<vmem>>, vector<1x8x32xf32>
    %384 = vector.shape_cast %383 : vector<1x8x32xf32> to vector<8x32xf32>
    %385 = vector.shape_cast %357 : vector<8x32xf32> to vector<1x8x32xf32>
    tpu.vector_store %arg6[%c0_111, %c0_112, %c0_113], %385 {strides = array<i32>} : memref<2x8x32xf32, #tpu.memory_space<vmem>>, vector<1x8x32xf32>,
    %c1 = arith.constant 1 : index
    %c0_114 = arith.constant 0 : index
    %c0_115 = arith.constant 0 : index
    %386 = vector.load %arg6[%c1, %c0_114, %c0_115] : memref<2x8x32xf32, #tpu.memory_space<vmem>>, vector<1x8x32xf32>
    %387 = vector.shape_cast %386 : vector<1x8x32xf32> to vector<8x32xf32>
    %388 = vector.shape_cast %378 : vector<8x32xf32> to vector<1x8x32xf32>
    tpu.vector_store %arg6[%c1, %c0_114, %c0_115], %388 {strides = array<i32>} : memref<2x8x32xf32, #tpu.memory_space<vmem>>, vector<1x8x32xf32>,
    %c0_116 = arith.constant 0 : index
    %c0_117 = arith.constant 0 : index
    %c0_118 = arith.constant 0 : index
    %389 = vector.load %arg7[%c0_116, %c0_117, %c0_118] : memref<2x8x32xf32, #tpu.memory_space<vmem>>, vector<1x8x32xf32>
    %390 = vector.shape_cast %389 : vector<1x8x32xf32> to vector<8x32xf32>
    %391 = vector.shape_cast %355 : vector<8x32xf32> to vector<1x8x32xf32>
    tpu.vector_store %arg7[%c0_116, %c0_117, %c0_118], %391 {strides = array<i32>} : memref<2x8x32xf32, #tpu.memory_space<vmem>>, vector<1x8x32xf32>,
    %c1_119 = arith.constant 1 : index
    %c0_120 = arith.constant 0 : index
    %c0_121 = arith.constant 0 : index
    %392 = vector.load %arg7[%c1_119, %c0_120, %c0_121] : memref<2x8x32xf32, #tpu.memory_space<vmem>>, vector<1x8x32xf32>
    %393 = vector.shape_cast %392 : vector<1x8x32xf32> to vector<8x32xf32>
    %394 = vector.shape_cast %376 : vector<8x32xf32> to vector<1x8x32xf32>
    tpu.vector_store %arg7[%c1_119, %c0_120, %c0_121], %394 {strides = array<i32>} : memref<2x8x32xf32, #tpu.memory_space<vmem>>, vector<1x8x32xf32>,
    return
  }
  func.func @transform_0(%arg0: i32) -> (i32, i32, i32) {
    %c0_i32 = arith.constant 0 : i32
    %c0_i32_0 = arith.constant 0 : i32
    %c0_i32_1 = arith.constant 0 : i32
    %c0_i32_2 = arith.constant 0 : i32
    return %c0_i32, %c0_i32_0, %c0_i32_1 : i32, i32, i32
  }
  func.func @transform_1(%arg0: i32) -> (i32, i32) {
    %c0_i32 = arith.constant 0 : i32
    %c0_i32_0 = arith.constant 0 : i32
    %c0_i32_1 = arith.constant 0 : i32
    return %c0_i32, %c0_i32_0 : i32, i32
  }
  func.func @transform_2(%arg0: i32) -> (i32, i32) {
    %c0_i32 = arith.constant 0 : i32
    %c0_i32_0 = arith.constant 0 : i32
    %c0_i32_1 = arith.constant 0 : i32
    return %c0_i32, %c0_i32_0 : i32, i32
  }
  func.func @transform_3(%arg0: i32) -> (i32, i32) {
    %c0_i32 = arith.constant 0 : i32
    %c0_i32_0 = arith.constant 0 : i32
    %c0_i32_1 = arith.constant 0 : i32
    return %c0_i32, %c0_i32_0 : i32, i32
  }
  func.func @transform_4(%arg0: i32) -> (i32, i32, i32) {
    %c0_i32 = arith.constant 0 : i32
    %c0_i32_0 = arith.constant 0 : i32
    %c0_i32_1 = arith.constant 0 : i32
    %c0_i32_2 = arith.constant 0 : i32
    return %c0_i32, %c0_i32_0, %c0_i32_1 : i32, i32, i32
  }
  func.func @transform_5(%arg0: i32) -> (i32, i32, i32) {
    %c0_i32 = arith.constant 0 : i32
    %c0_i32_0 = arith.constant 0 : i32
    %c0_i32_1 = arith.constant 0 : i32
    %c0_i32_2 = arith.constant 0 : i32
    return %c0_i32, %c0_i32_0, %c0_i32_1 : i32, i32, i32
  }
  func.func @transform_6(%arg0: i32) -> (i32, i32, i32) {
    %c0_i32 = arith.constant 0 : i32
    %c0_i32_0 = arith.constant 0 : i32
    %c0_i32_1 = arith.constant 0 : i32
    %c0_i32_2 = arith.constant 0 : i32
    return %c0_i32, %c0_i32_0, %c0_i32_1 : i32, i32, i32
  }
}

</mosaic_0001>

<bundles_post_ra>
// kernel: encoder_forward.1
= control target key start
LH: loop header
LB: loop body
LE: loop exit
PB: predicated region body
PF: predicated region fallthrough
CT: control target
= control target key end

     0   :  { %v2381_v0 = vmov 0.0   ;;  %vm2382_vm0 = vmmov 0   ;;  %v20_v12 = vlaneseq  ;;  %s2383_s7 = smov 64   ;;  %s2384_s8 = smov 32   ;;  %vm30_vm4 = vcmask 261120   ;;  %s3006_s1 = inlined_call_operand.vmem [shape: f32[32,128], index: 1, kind: input, shape index: {}]   ;;  %s3007_s0 = inlined_call_operand.vmem [shape: f32[8,8,128], index: 0, kind: input, shape index: {}]   ;;  %s3008_s2 = inlined_call_operand.vmem [shape: f32[64,128], index: 2, kind: input, shape index: {}]   ;;  %s3009_s3 = inlined_call_operand.vmem [shape: f32[8,128], index: 3, kind: input, shape index: {}]   ;;  %s3010_s5 = inlined_call_operand.vmem [shape: f32[2,8,32], index: 5, kind: output, shape index: {1}]   ;;  %s3011_s4 = inlined_call_operand.vmem [shape: f32[8,8,32], index: 4, kind: output, shape index: {0}]   ;;  %s3012_s6 = inlined_call_operand.vmem [shape: f32[2,8,32], index: 6, kind: output, shape index: {2}]  }
   0x1   :  { %2008 = vmatprep.subr.mxu1 %v2381_v0  ;;  %v2425_v1 = vld [vmem:[%s3006_s1 + $0x18] sm:$0xff]  ;;  %v2430_v2 = vld [vmem:[%s3006_s1 + $0x10] sm:$0xff]  ;;  %2016 = vmatprep.mubr.msk.f32.mxu1 %vm2382_vm0, %v2381_v0  ;;  %v2440_v3 = vld [vmem:[%s3006_s1 + $0x8] sm:$0xff]  ;;  %vm144_vm5 = vcmask 523264   ;;  %s2385_s21 = smov 96  }
   0x2   :  { %2009 = vmatpush3.msra.mxu1 %v2425_v1  ;;  %2038 = vmatprep.subr.mxu0 %v2381_v0  ;;  %v2449_v4 = vld [vmem:[%s3006_s1] sm:$0xff]  ;;  %v21_v13 = vand.u32 127, %v20_v12  ;;  %v2483_v23 = vld [vmem:[%s3008_s2 + $0x38] sm:$0xff]  ;;  %v2488_v24 = vld [vmem:[%s3008_s2 + $0x30] sm:$0xff] }
   0x3   :  { %2010 = vmatprep.subr.mxu1 %v2381_v0  ;;  %2039 = vmatpush3.msra.mxu0 %v2425_v1  ;;  %v25_v5 = vld [vmem:[%s3007_s0] sm:$0xff]  ;;  %v2495_v25 = vld [vmem:[%s3008_s2 + $0x28] sm:$0xff]  ;;  %v2509_v27 = vld [vmem:[%s3008_s2 + $0x18] sm:$0xff] }
   0x4   :  { %2011 = vmatpush3.msra.mxu1 %v2430_v2  ;;  %2040 = vmatprep.subr.mxu0 %v2381_v0  ;;  %vm22_vm1 = vcmp.ge.s32.totalorder %v21_v13, 64  ;;  %vm23_vm2 = vcmp.lt.s32.totalorder %v21_v13, 96  ;;  %v2502_v26 = vld [vmem:[%s3008_s2 + $0x20] sm:$0xff]  ;;  %v2516_v28 = vld [vmem:[%s3008_s2 + $0x10] sm:$0xff]  ;;  %v2524_v30 = vld [vmem:[%s3008_s2 + $0x8] sm:$0xff] }
   0x5   :  { %2012 = vmatprep.subr.mxu1 %v2381_v0  ;;  %2041 = vmatpush3.msra.mxu0 %v2430_v2  ;;  %vm2469_vm3 = vmand %vm22_vm1, %vm23_vm2  ;;  %v2533_v31 = vld [vmem:[%s3008_s2] sm:$0xff]  ;;  %v1852_v36 = vld [vmem:[%s3007_s0 + $0x8] sm:$0xff] }
   0x6   :  { %2013 = vmatpush3.msra.mxu1 %v2440_v3  ;;  %2042 = vmatprep.subr.mxu0 %v2381_v0  ;;  %v2575_v37 = vld [vmem:[%s3009_s3] sm:$0xff] }
   0x7   :  { %2014 = vmatprep.subr.mxu1 %v2381_v0  ;;  %2043 = vmatpush3.msra.mxu0 %v2440_v3 }
   0x8   :  { %2015 = vmatpush3.msra.mxu1 %v2449_v4  ;;  %2044 = vmatprep.subr.mxu0 %v2381_v0 }
   0x9   :  { %2017 = vmatmul.mubr.f32.vlgmr.msra.gmra.mxu1 %v2381_v0  ;;  %2019 = vmatprep.subr.mxu1 %v2381_v0 }
   0xa   :  { %2045 = vmatpush3.msra.mxu0 %v2449_v4  ;;  %2046 = vmatprep.mubr.msk.f32.mxu0 %vm2382_vm0, %v2381_v0 }
   0xb   :  { %2035 = vmatprep.mubr.msk.f32.mxu1 %vm2382_vm0, %v2381_v0  ;;  %2049 = vmatprep.subr.mxu0 %v2381_v0 }
   0xc   :  { %2020 = vmatpush3.msra.mxu1 %v2483_v23 }
   0xd   :  { %2021 = vmatprep.subr.mxu1 %v2381_v0 }
   0xe   :  { %2022 = vmatpush3.msra.mxu1 %v2488_v24 }
   0xf   :  { %2023 = vmatprep.subr.mxu1 %v2381_v0 }
  0x10   :  { %2024 = vmatpush3.msra.mxu1 %v2495_v25 }
  0x11   :  { %2025 = vmatprep.subr.mxu1 %v2381_v0 }
  0x12   :  { %2026 = vmatpush3.msra.mxu1 %v2502_v26 }
  0x13   :  { %2027 = vmatprep.subr.mxu1 %v2381_v0 }
  0x14   :  { %2028 = vmatpush3.msra.mxu1 %v2509_v27 }
  0x15   :  { %2029 = vmatprep.subr.mxu1 %v2381_v0 }
  0x16   :  { %2030 = vmatpush3.msra.mxu1 %v2516_v28 }
  0x17   :  { %2031 = vmatprep.subr.mxu1 %v2381_v0 }
  0x18   :  { %2032 = vmatpush3.msra.mxu1 %v2524_v30 }
  0x19   :  { %2033 = vmatprep.subr.mxu1 %v2381_v0 }
  0x1a   :  { %2034 = vmatpush3.msra.mxu1 %v2533_v31 }
  0x1b   :  { %2068 = vmatprep.subr.mxu1 %v2381_v0 }
  0xc9   :  { %v100_v6 = vpop.f32.mrf.mxu1 }
  0xca   :  { %v104_v7 = vadd.f32 %v100_v6, %v25_v5 }
  0xcb   :  { %v2018_v8 = vpop.f32.mrf.mxu1 }
  0xcc   :  { %v1849_v9 = vmul.f32 -1.442695, %v104_v7 }
  0xce   :  { %2253 = vpow2.f32 %v1849_v9 }
  0xcf   :  { %2255 = vtanh.f32 %v104_v7 }
  0xdb   :  { %v2254_v10 = vpop.eup %2253 }
  0xdc   :  { %v109_v11 = vadd.f32 1.0, %v2254_v10  ;;  %v2256_v15 = vpop.eup %2255 }
  0xde   :  { %2257 = vrcp.f32 %v109_v11 }
  0xeb   :  { %v2258_v16 = vpop.eup %2257 }
  0xec   :  { %v112_v17 = vsel %vm2469_vm3, %v2256_v15, %v2258_v16 }
  0xed   :  { %115 = vrot.lane.b32.xlu0 %v112_v17, %s2383_s7  ;;  %v113_v20 = vmul.f32 0.0, %v112_v17 }
 0x15f   :  { %v116_v18 = vpop.permute.xlu0 %115 }
 0x160   :  { %v118_v19 = vmul.f32 %v116_v18, %v112_v17 }
 0x162   :  { %120 = vrot.lane.b32.xlu0 %v118_v19, %s2384_s8 }
 0x1d4   :  { %v121_v21 = vpop.permute.xlu0 %120 }
 0x1d5   :  { %v2477_v22 = vadd.f32 %v121_v21, %v113_v20 }
 0x1d7   :  { %2259 = vtanh.f32 %v2477_v22 }
 0x1e4   :  { %v2260_v29 = vpop.eup %2259 }
 0x1e5   :  { %126 = vrot.lane.b32.xlu1 %v2260_v29, %s2383_s7 }
 0x257   :  { %v127_v32 = vpop.permute.xlu1 %126 }
 0x258   :  { %v129_v33 = vmul.f32 %v127_v32, %v112_v17  ;;  %v1858_v17 = vld [vmem:[%s3007_s0 + $0x10] sm:$0xff] }
 0x25a   :  { %131 = vrot.lane.b32.xlu1 %v129_v33, %s2384_s8 }
 0x2cc   :  { %v132_v34 = vpop.permute.xlu1 %131 }
 0x2cd   :  { %v134_v35 = vsel %vm30_vm4, %v132_v34, 0.0  ;;  %2047 = vmatmul.mubr.msk.f32.vlgmr.msra.gmra.mxu0 %vm30_vm4, %v132_v34 }
 0x2ce   :  { %2036 = vmatmul.mubr.msk.f32.vlgmr.msra.gmra.mxu1 %vm144_vm5, %v134_v35  ;;  %2050 = vmatpush3.msra.mxu0 %v2483_v23 }
 0x2cf   :  { %2051 = vmatprep.subr.mxu0 %v2381_v0  ;;  %2069 = vmatpush3.msra.mxu1 %v2425_v1 }
 0x2d0   :  { %2052 = vmatpush3.msra.mxu0 %v2488_v24  ;;  %2070 = vmatprep.subr.mxu1 %v2381_v0 }
 0x2d1   :  { %2053 = vmatprep.subr.mxu0 %v2381_v0  ;;  %2071 = vmatpush3.msra.mxu1 %v2430_v2 }
 0x2d2   :  { %2054 = vmatpush3.msra.mxu0 %v2495_v25  ;;  %2072 = vmatprep.subr.mxu1 %v2381_v0 }
 0x2d3   :  { %2055 = vmatprep.subr.mxu0 %v2381_v0  ;;  %2073 = vmatpush3.msra.mxu1 %v2440_v3 }
 0x2d4   :  { %2056 = vmatpush3.msra.mxu0 %v2502_v26  ;;  %2074 = vmatprep.subr.mxu1 %v2381_v0 }
 0x2d5   :  { %2057 = vmatprep.subr.mxu0 %v2381_v0  ;;  %2075 = vmatpush3.msra.mxu1 %v2449_v4 }
 0x2d6   :  { %2058 = vmatpush3.msra.mxu0 %v2509_v27  ;;  %2076 = vmatprep.mubr.msk.f32.mxu1 %vm2382_vm0, %v2381_v0 }
 0x2d7   :  { %2059 = vmatprep.subr.mxu0 %v2381_v0  ;;  %2065 = vmatprep.mubr.msk.f32.mxu0 %vm2382_vm0, %v2381_v0 }
 0x2d8   :  { %2060 = vmatpush3.msra.mxu0 %v2516_v28  ;;  %2079 = vmatprep.subr.mxu1 %v2381_v0 }
 0x2d9   :  { %2061 = vmatprep.subr.mxu0 %v2381_v0 }
 0x2da   :  { %2062 = vmatpush3.msra.mxu0 %v2524_v30 }
 0x2db   :  { %2063 = vmatprep.subr.mxu0 %v2381_v0 }
 0x2dc   :  { %2064 = vmatpush3.msra.mxu0 %v2533_v31 }
 0x2dd   :  { %2098 = vmatprep.subr.mxu0 %v2381_v0 }
 0x38d   :  { %v322_v38 = vpop.f32.mrf.mxu0 }
 0x38e   :  { %v326_v39 = vadd.f32 %v1852_v36, %v322_v38  ;;  %v214_v40 = vpop.f32.mrf.mxu1 }
 0x38f   :  { %v215_v41 = vadd.f32 %v214_v40, %v2575_v37  ;;  %v2048_v42 = vpop.f32.mrf.mxu0 }
 0x390   :  { %v1854_v43 = vmul.f32 -1.442695, %v326_v39  ;;  %v2037_v44 = vpop.f32.mrf.mxu1 }
 0x391   :  { %v1851_v45 = vmul.f32 -1.442695, %v215_v41 }
 0x392   :  { %2261 = vpow2.f32 %v1854_v43 }
 0x393   :  { %2263 = vpow2.f32 %v1851_v45 }
 0x394   :  { %2265 = vtanh.f32 %v326_v39 }
 0x395   :  { %2267 = vtanh.f32 %v215_v41 }
 0x39f   :  { %v2262_v46 = vpop.eup %2261 }
 0x3a0   :  { %v2264_v47 = vpop.eup %2263  ;;  %v331_v48 = vadd.f32 1.0, %v2262_v46 }
 0x3a1   :  { %v222_v49 = vadd.f32 1.0, %v2264_v47  ;;  %v2266_v50 = vpop.eup %2265 }
 0x3a2   :  { %2269 = vrcp.f32 %v331_v48  ;;  %v2268_v51 = vpop.eup %2267 }
 0x3a3   :  { %2271 = vrcp.f32 %v222_v49 }
 0x3af   :  { %v2270_v52 = vpop.eup %2269 }
 0x3b0   :  { %v2272_v53 = vpop.eup %2271  ;;  %v334_v54 = vsel %vm2469_vm3, %v2266_v50, %v2270_v52 }
 0x3b1   :  { %337 = vrot.lane.b32.xlu1 %v334_v54, %s2383_s7  ;;  %v225_v55 = vsel %vm2469_vm3, %v2268_v51, %v2272_v53  ;;  %v335_v60 = vmul.f32 %v334_v54, %v2477_v22 }
 0x3b2   :  { %228 = vrot.lane.b32.xlu0 %v225_v55, %s2383_s7  ;;  %v226_v62 = vmul.f32 0.0, %v225_v55 }
 0x423   :  { %v338_v56 = vpop.permute.xlu1 %337 }
 0x424   :  { %v340_v57 = vmul.f32 %v338_v56, %v334_v54  ;;  %v229_v58 = vpop.permute.xlu0 %228 }
 0x425   :  { %v231_v59 = vmul.f32 %v229_v58, %v225_v55 }
 0x426   :  { %342 = vrot.lane.b32.xlu1 %v340_v57, %s2384_s8 }
 0x427   :  { %233 = vrot.lane.b32.xlu0 %v231_v59, %s2384_s8 }
 0x498   :  { %v343_v61 = vpop.permute.xlu1 %342 }
 0x499   :  { %v2587_v63 = vadd.f32 %v343_v61, %v335_v60  ;;  %v234_v5 = vpop.permute.xlu0 %233 }
 0x49a   :  { %v2589_v6 = vadd.f32 %v234_v5, %v226_v62  ;;  %v1864_v5 = vld [vmem:[%s3007_s0 + $0x18] sm:$0xff] }
 0x49b   :  { %2273 = vtanh.f32 %v2587_v63 }
 0x49c   :  { %2275 = vtanh.f32 %v2589_v6 }
 0x4a8   :  { %v2274_v7 = vpop.eup %2273 }
 0x4a9   :  { %v2276_v8 = vpop.eup %2275  ;;  %348 = vrot.lane.b32.xlu1 %v2274_v7, %s2383_s7 }
 0x4aa   :  { %239 = vrot.lane.b32.xlu0 %v2276_v8, %s2383_s7 }
 0x51b   :  { %v349_v9 = vpop.permute.xlu1 %348 }
 0x51c   :  { %v351_v10 = vmul.f32 %v349_v9, %v334_v54  ;;  %v240_v11 = vpop.permute.xlu0 %239 }
 0x51d   :  { %v2595_v12 = vmul.f32 %v240_v11, %v225_v55 }
 0x51e   :  { %353 = vrot.lane.b32.xlu0 %v351_v10, %s2384_s8 }
 0x51f   :  { %356 = vrot.lane.b32.xlu1 %v2595_v12, %s2383_s7 }
 0x590   :  { %v354_v13 = vpop.permute.xlu0 %353 }
 0x591   :  { %v357_v15 = vpop.permute.xlu1 %356  ;;  %2077 = vmatmul.mubr.msk.f32.vlgmr.msra.gmra.mxu1 %vm30_vm4, %v354_v13 }
 0x592   :  { %v359_v16 = vsel %vm30_vm4, %v354_v13, %v357_v15  ;;  %2080 = vmatpush3.msra.mxu1 %v2483_v23  ;;  %2095 = vmatprep.mubr.msk.f32.mxu1 %vm2382_vm0, %v2381_v0 }
 0x593   :  { %2066 = vmatmul.mubr.msk.f32.vlgmr.msra.gmra.mxu0 %vm144_vm5, %v359_v16  ;;  %2081 = vmatprep.subr.mxu1 %v2381_v0 }
 0x594   :  { %2082 = vmatpush3.msra.mxu1 %v2488_v24  ;;  %2099 = vmatpush3.msra.mxu0 %v2425_v1 }
 0x595   :  { %2083 = vmatprep.subr.mxu1 %v2381_v0  ;;  %2100 = vmatprep.subr.mxu0 %v2381_v0 }
 0x596   :  { %2084 = vmatpush3.msra.mxu1 %v2495_v25  ;;  %2101 = vmatpush3.msra.mxu0 %v2430_v2 }
 0x597   :  { %2085 = vmatprep.subr.mxu1 %v2381_v0  ;;  %2102 = vmatprep.subr.mxu0 %v2381_v0 }
 0x598   :  { %2086 = vmatpush3.msra.mxu1 %v2502_v26  ;;  %2103 = vmatpush3.msra.mxu0 %v2440_v3 }
 0x599   :  { %2087 = vmatprep.subr.mxu1 %v2381_v0  ;;  %2104 = vmatprep.subr.mxu0 %v2381_v0 }
 0x59a   :  { %2088 = vmatpush3.msra.mxu1 %v2509_v27  ;;  %2105 = vmatpush3.msra.mxu0 %v2449_v4 }
 0x59b   :  { %2089 = vmatprep.subr.mxu1 %v2381_v0  ;;  %2106 = vmatprep.mubr.msk.f32.mxu0 %vm2382_vm0, %v2381_v0 }
 0x59c   :  { %2090 = vmatpush3.msra.mxu1 %v2516_v28  ;;  %2109 = vmatprep.subr.mxu0 %v2381_v0 }
 0x59d   :  { %2091 = vmatprep.subr.mxu1 %v2381_v0 }
 0x59e   :  { %2092 = vmatpush3.msra.mxu1 %v2524_v30 }
 0x59f   :  { %2093 = vmatprep.subr.mxu1 %v2381_v0 }
 0x5a0   :  { %2094 = vmatpush3.msra.mxu1 %v2533_v31 }
 0x5a1   :  { %2128 = vmatprep.subr.mxu1 %v2381_v0 }
 0x651   :  { %v547_v18 = vpop.f32.mrf.mxu1 }
 0x652   :  { %v551_v19 = vadd.f32 %v1858_v17, %v547_v18 }
 0x653   :  { %v438_v20 = vpop.f32.mrf.mxu0  ;;  %v2078_v21 = vpop.f32.mrf.mxu1 }
 0x654   :  { %v1860_v22 = vmul.f32 -1.442695, %v551_v19  ;;  %v439_v29 = vadd.f32 %v438_v20, %v2575_v37 }
 0x655   :  { %v2067_v32 = vpop.f32.mrf.mxu0 }
 0x656   :  { %2277 = vpow2.f32 %v1860_v22  ;;  %v1856_v33 = vmul.f32 -1.442695, %v439_v29 }
 0x658   :  { %2279 = vpow2.f32 %v1856_v33 }
 0x659   :  { %2281 = vtanh.f32 %v551_v19 }
 0x663   :  { %v2278_v34 = vpop.eup %2277 }
 0x664   :  { %v556_v35 = vadd.f32 1.0, %v2278_v34 }
 0x665   :  { %v2280_v36 = vpop.eup %2279 }
 0x666   :  { %2283 = vrcp.f32 %v556_v35  ;;  %v446_v38 = vadd.f32 1.0, %v2280_v36  ;;  %v2282_v39 = vpop.eup %2281 }
 0x667   :  { %2285 = vtanh.f32 %v439_v29 }
 0x668   :  { %2287 = vrcp.f32 %v446_v38 }
 0x673   :  { %v2284_v40 = vpop.eup %2283 }
 0x674   :  { %v2286_v41 = vpop.eup %2285  ;;  %v559_v42 = vsel %vm2469_vm3, %v2282_v39, %v2284_v40 }
 0x675   :  { %v2288_v43 = vpop.eup %2287  ;;  %562 = vrot.lane.b32.xlu1 %v559_v42, %s2383_s7  ;;  %v560_v49 = vmul.f32 %v559_v42, %v2587_v63 }
 0x676   :  { %v449_v44 = vsel %vm2469_vm3, %v2286_v41, %v2288_v43 }
 0x677   :  { %452 = vrot.lane.b32.xlu0 %v449_v44, %s2383_s7  ;;  %v450_v52 = vmul.f32 %v449_v44, %v2589_v6 }
 0x6e7   :  { %v563_v45 = vpop.permute.xlu1 %562 }
 0x6e8   :  { %v565_v46 = vmul.f32 %v563_v45, %v559_v42 }
 0x6e9   :  { %v453_v47 = vpop.permute.xlu0 %452 }
 0x6ea   :  { %v455_v48 = vmul.f32 %v453_v47, %v449_v44  ;;  %567 = vrot.lane.b32.xlu1 %v565_v46, %s2384_s8 }
 0x6ec   :  { %457 = vrot.lane.b32.xlu0 %v455_v48, %s2384_s8 }
 0x75c   :  { %v568_v50 = vpop.permute.xlu1 %567 }
 0x75d   :  { %v2644_v51 = vadd.f32 %v568_v50, %v560_v49 }
 0x75e   :  { %v458_v53 = vpop.permute.xlu0 %457 }
 0x75f   :  { %2289 = vtanh.f32 %v2644_v51  ;;  %v2648_v54 = vadd.f32 %v458_v53, %v450_v52 }
 0x761   :  { %2291 = vtanh.f32 %v2648_v54 }
 0x76c   :  { %v2290_v55 = vpop.eup %2289 }
 0x76d   :  { %573 = vrot.lane.b32.xlu1 %v2290_v55, %s2383_s7 }
 0x76e   :  { %v2292_v56 = vpop.eup %2291 }
 0x76f   :  { %463 = vrot.lane.b32.xlu0 %v2292_v56, %s2383_s7 }
 0x7df   :  { %v574_v57 = vpop.permute.xlu1 %573 }
 0x7e0   :  { %v576_v58 = vmul.f32 %v574_v57, %v559_v42 }
 0x7e1   :  { %v464_v59 = vpop.permute.xlu0 %463 }
 0x7e2   :  { %v2653_v60 = vmul.f32 %v464_v59, %v449_v44  ;;  %578 = vrot.lane.b32.xlu0 %v576_v58, %s2384_s8 }
 0x7e4   :  { %581 = vrot.lane.b32.xlu1 %v2653_v60, %s2383_s7 }
 0x854   :  { %v579_v61 = vpop.permute.xlu0 %578 }
 0x855   :  { %2107 = vmatmul.mubr.msk.f32.vlgmr.msra.gmra.mxu0 %vm30_vm4, %v579_v61 }
 0x856   :  { %v582_v62 = vpop.permute.xlu1 %581  ;;  %2110 = vmatpush3.msra.mxu0 %v2483_v23  ;;  %2125 = vmatprep.mubr.msk.f32.mxu0 %vm2382_vm0, %v2381_v0 }
 0x857   :  { %v584_v63 = vsel %vm30_vm4, %v579_v61, %v582_v62  ;;  %2111 = vmatprep.subr.mxu0 %v2381_v0 }
 0x858   :  { %2096 = vmatmul.mubr.msk.f32.vlgmr.msra.gmra.mxu1 %vm144_vm5, %v584_v63  ;;  %2112 = vmatpush3.msra.mxu0 %v2488_v24 }
 0x859   :  { %2113 = vmatprep.subr.mxu0 %v2381_v0  ;;  %2129 = vmatpush3.msra.mxu1 %v2425_v1 }
 0x85a   :  { %2114 = vmatpush3.msra.mxu0 %v2495_v25  ;;  %2130 = vmatprep.subr.mxu1 %v2381_v0 }
 0x85b   :  { %2115 = vmatprep.subr.mxu0 %v2381_v0  ;;  %2131 = vmatpush3.msra.mxu1 %v2430_v2 }
 0x85c   :  { %2116 = vmatpush3.msra.mxu0 %v2502_v26  ;;  %2132 = vmatprep.subr.mxu1 %v2381_v0 }
 0x85d   :  { %2117 = vmatprep.subr.mxu0 %v2381_v0  ;;  %2133 = vmatpush3.msra.mxu1 %v2440_v3 }
 0x85e   :  { %2118 = vmatpush3.msra.mxu0 %v2509_v27  ;;  %2134 = vmatprep.subr.mxu1 %v2381_v0 }
 0x85f   :  { %2119 = vmatprep.subr.mxu0 %v2381_v0  ;;  %2135 = vmatpush3.msra.mxu1 %v2449_v4 }
 0x860   :  { %2120 = vmatpush3.msra.mxu0 %v2516_v28  ;;  %2136 = vmatprep.mubr.msk.f32.mxu1 %vm2382_vm0, %v2381_v0 }
 0x861   :  { %2121 = vmatprep.subr.mxu0 %v2381_v0  ;;  %2139 = vmatprep.subr.mxu1 %v2381_v0 }
 0x862   :  { %2122 = vmatpush3.msra.mxu0 %v2524_v30 }
 0x863   :  { %2123 = vmatprep.subr.mxu0 %v2381_v0 }
 0x864   :  { %2124 = vmatpush3.msra.mxu0 %v2533_v31 }
 0x865   :  { %2158 = vmatprep.subr.mxu0 %v2381_v0 }
 0x915   :  { %v772_v6 = vpop.f32.mrf.mxu0 }
 0x916   :  { %v776_v7 = vadd.f32 %v1864_v5, %v772_v6 }
 0x917   :  { %v2108_v8 = vpop.f32.mrf.mxu0 }
 0x918   :  { %v1866_v9 = vmul.f32 -1.442695, %v776_v7  ;;  %v663_v10 = vpop.f32.mrf.mxu1 }
 0x919   :  { %v664_v11 = vadd.f32 %v663_v10, %v2575_v37 }
 0x91a   :  { %2293 = vpow2.f32 %v1866_v9  ;;  %v2097_v13 = vpop.f32.mrf.mxu1 }
 0x91b   :  { %v1862_v15 = vmul.f32 -1.442695, %v664_v11 }
 0x91d   :  { %2295 = vpow2.f32 %v1862_v15 }
 0x91e   :  { %2297 = vtanh.f32 %v776_v7 }
 0x927   :  { %v2294_v16 = vpop.eup %2293 }
 0x928   :  { %v781_v17 = vadd.f32 1.0, %v2294_v16 }
 0x92a   :  { %v2296_v18 = vpop.eup %2295  ;;  %2299 = vrcp.f32 %v781_v17 }
 0x92b   :  { %v671_v19 = vadd.f32 1.0, %v2296_v18  ;;  %2301 = vtanh.f32 %v664_v11  ;;  %v2298_v20 = vpop.eup %2297 }
 0x92d   :  { %2303 = vrcp.f32 %v671_v19 }
 0x937   :  { %v2300_v21 = vpop.eup %2299 }
 0x938   :  { %v784_v22 = vsel %vm2469_vm3, %v2298_v20, %v2300_v21  ;;  %v2302_v29 = vpop.eup %2301 }
 0x939   :  { %787 = vrot.lane.b32.xlu1 %v784_v22, %s2383_s7  ;;  %v785_v39 = vmul.f32 %v784_v22, %v2644_v51 }
 0x93a   :  { %v2304_v32 = vpop.eup %2303 }
 0x93b   :  { %v674_v33 = vsel %vm2469_vm3, %v2302_v29, %v2304_v32 }
 0x93c   :  { %677 = vrot.lane.b32.xlu0 %v674_v33, %s2383_s7  ;;  %v675_v42 = vmul.f32 %v674_v33, %v2648_v54  ;;  %v1870_v54 = vld [vmem:[%s3007_s0 + $0x20] sm:$0xff] }
 0x9ab   :  { %v788_v34 = vpop.permute.xlu1 %787 }
 0x9ac   :  { %v790_v35 = vmul.f32 %v788_v34, %v784_v22 }
 0x9ae   :  { %792 = vrot.lane.b32.xlu1 %v790_v35, %s2384_s8  ;;  %v678_v36 = vpop.permute.xlu0 %677 }
 0x9af   :  { %v680_v38 = vmul.f32 %v678_v36, %v674_v33 }
 0x9b1   :  { %682 = vrot.lane.b32.xlu0 %v680_v38, %s2384_s8 }
 0xa20   :  { %v793_v40 = vpop.permute.xlu1 %792 }
 0xa21   :  { %v2702_v41 = vadd.f32 %v793_v40, %v785_v39 }
 0xa23   :  { %2305 = vtanh.f32 %v2702_v41  ;;  %v683_v43 = vpop.permute.xlu0 %682 }
 0xa24   :  { %v2706_v44 = vadd.f32 %v683_v43, %v675_v42 }
 0xa26   :  { %2307 = vtanh.f32 %v2706_v44 }
 0xa30   :  { %v2306_v45 = vpop.eup %2305 }
 0xa31   :  { %798 = vrot.lane.b32.xlu1 %v2306_v45, %s2383_s7 }
 0xa33   :  { %v2308_v46 = vpop.eup %2307 }
 0xa34   :  { %688 = vrot.lane.b32.xlu0 %v2308_v46, %s2383_s7 }
 0xaa3   :  { %v799_v47 = vpop.permute.xlu1 %798 }
 0xaa4   :  { %v801_v48 = vmul.f32 %v799_v47, %v784_v22 }
 0xaa6   :  { %803 = vrot.lane.b32.xlu0 %v801_v48, %s2384_s8  ;;  %v689_v49 = vpop.permute.xlu0 %688 }
 0xaa7   :  { %v2712_v50 = vmul.f32 %v689_v49, %v674_v33 }
 0xaa9   :  { %806 = vrot.lane.b32.xlu1 %v2712_v50, %s2383_s7 }
 0xb18   :  { %v804_v51 = vpop.permute.xlu0 %803 }
 0xb19   :  { %2137 = vmatmul.mubr.msk.f32.vlgmr.msra.gmra.mxu1 %vm30_vm4, %v804_v51 }
 0xb1a   :  { %2140 = vmatpush3.msra.mxu1 %v2483_v23  ;;  %2155 = vmatprep.mubr.msk.f32.mxu1 %vm2382_vm0, %v2381_v0 }
 0xb1b   :  { %v807_v52 = vpop.permute.xlu1 %806  ;;  %2141 = vmatprep.subr.mxu1 %v2381_v0 }
 0xb1c   :  { %v809_v53 = vsel %vm30_vm4, %v804_v51, %v807_v52  ;;  %2142 = vmatpush3.msra.mxu1 %v2488_v24 }
 0xb1d   :  { %2126 = vmatmul.mubr.msk.f32.vlgmr.msra.gmra.mxu0 %vm144_vm5, %v809_v53  ;;  %2143 = vmatprep.subr.mxu1 %v2381_v0 }
 0xb1e   :  { %2159 = vmatpush3.msra.mxu0 %v2425_v1  ;;  %2144 = vmatpush3.msra.mxu1 %v2495_v25 }
 0xb1f   :  { %2160 = vmatprep.subr.mxu0 %v2381_v0  ;;  %2145 = vmatprep.subr.mxu1 %v2381_v0 }
 0xb20   :  { %2161 = vmatpush3.msra.mxu0 %v2430_v2  ;;  %2146 = vmatpush3.msra.mxu1 %v2502_v26 }
 0xb21   :  { %2162 = vmatprep.subr.mxu0 %v2381_v0  ;;  %2147 = vmatprep.subr.mxu1 %v2381_v0 }
 0xb22   :  { %2163 = vmatpush3.msra.mxu0 %v2440_v3  ;;  %2148 = vmatpush3.msra.mxu1 %v2509_v27 }
 0xb23   :  { %2164 = vmatprep.subr.mxu0 %v2381_v0  ;;  %2149 = vmatprep.subr.mxu1 %v2381_v0 }
 0xb24   :  { %2165 = vmatpush3.msra.mxu0 %v2449_v4  ;;  %2166 = vmatprep.mubr.msk.f32.mxu0 %vm2382_vm0, %v2381_v0 }
 0xb25   :  { %2150 = vmatpush3.msra.mxu1 %v2516_v28  ;;  %2169 = vmatprep.subr.mxu0 %v2381_v0 }
 0xb26   :  { %2151 = vmatprep.subr.mxu1 %v2381_v0 }
 0xb27   :  { %2152 = vmatpush3.msra.mxu1 %v2524_v30 }
 0xb28   :  { %2153 = vmatprep.subr.mxu1 %v2381_v0 }
 0xb29   :  { %2154 = vmatpush3.msra.mxu1 %v2533_v31 }
 0xb2a   :  { %2188 = vmatprep.subr.mxu1 %v2381_v0 }
 0xbd9   :  { %v997_v55 = vpop.f32.mrf.mxu1 }
 0xbda   :  { %v1001_v56 = vadd.f32 %v1870_v54, %v997_v55 }
 0xbdb   :  { %v2138_v57 = vpop.f32.mrf.mxu1 }
 0xbdc   :  { %v1872_v58 = vmul.f32 -1.442695, %v1001_v56 }
 0xbdd   :  { %v888_v59 = vpop.f32.mrf.mxu0 }
 0xbde   :  { %2309 = vpow2.f32 %v1872_v58  ;;  %v889_v61 = vadd.f32 %v888_v59, %v2575_v37 }
 0xbdf   :  { %v2127_v62 = vpop.f32.mrf.mxu0 }
 0xbe0   :  { %v1868_v63 = vmul.f32 -1.442695, %v889_v61 }
 0xbe2   :  { %2311 = vpow2.f32 %v1868_v63 }
 0xbe3   :  { %2313 = vtanh.f32 %v1001_v56 }
 0xbeb   :  { %v2310_v5 = vpop.eup %2309 }
 0xbec   :  { %v1006_v6 = vadd.f32 1.0, %v2310_v5 }
 0xbee   :  { %2315 = vrcp.f32 %v1006_v6 }
 0xbef   :  { %v2312_v7 = vpop.eup %2311  ;;  %2317 = vtanh.f32 %v889_v61 }
 0xbf0   :  { %v896_v8 = vadd.f32 1.0, %v2312_v7  ;;  %v2314_v9 = vpop.eup %2313 }
 0xbf2   :  { %2319 = vrcp.f32 %v896_v8 }
 0xbfb   :  { %v2316_v10 = vpop.eup %2315 }
 0xbfc   :  { %v1009_v11 = vsel %vm2469_vm3, %v2314_v9, %v2316_v10  ;;  %v2318_v13 = vpop.eup %2317 }
 0xbfd   :  { %1012 = vrot.lane.b32.xlu1 %v1009_v11, %s2383_s7  ;;  %v1010_v21 = vmul.f32 %v1009_v11, %v2702_v41 }
 0xbff   :  { %v2320_v15 = vpop.eup %2319 }
 0xc00   :  { %v899_v16 = vsel %vm2469_vm3, %v2318_v13, %v2320_v15 }
 0xc01   :  { %902 = vrot.lane.b32.xlu0 %v899_v16, %s2383_s7  ;;  %v900_v32 = vmul.f32 %v899_v16, %v2706_v44 }
 0xc6f   :  { %v1013_v17 = vpop.permute.xlu1 %1012 }
 0xc70   :  { %v1015_v18 = vmul.f32 %v1013_v17, %v1009_v11 }
 0xc72   :  { %1017 = vrot.lane.b32.xlu1 %v1015_v18, %s2384_s8 }
 0xc73   :  { %v903_v19 = vpop.permute.xlu0 %902 }
 0xc74   :  { %v905_v20 = vmul.f32 %v903_v19, %v899_v16 }
 0xc76   :  { %907 = vrot.lane.b32.xlu0 %v905_v20, %s2384_s8 }
 0xce4   :  { %v1018_v22 = vpop.permute.xlu1 %1017 }
 0xce5   :  { %v2760_v29 = vadd.f32 %v1018_v22, %v1010_v21 }
 0xce7   :  { %2321 = vtanh.f32 %v2760_v29 }
 0xce8   :  { %v908_v33 = vpop.permute.xlu0 %907 }
 0xce9   :  { %v2764_v34 = vadd.f32 %v908_v33, %v900_v32 }
 0xceb   :  { %2323 = vtanh.f32 %v2764_v34 }
 0xcf4   :  { %v2322_v35 = vpop.eup %2321 }
 0xcf5   :  { %1023 = vrot.lane.b32.xlu1 %v2322_v35, %s2383_s7 }
 0xcf8   :  { %v2324_v36 = vpop.eup %2323 }
 0xcf9   :  { %913 = vrot.lane.b32.xlu0 %v2324_v36, %s2383_s7 }
 0xd67   :  { %v1024_v38 = vpop.permute.xlu1 %1023 }
 0xd68   :  { %v1026_v39 = vmul.f32 %v1024_v38, %v1009_v11 }
 0xd6a   :  { %1028 = vrot.lane.b32.xlu0 %v1026_v39, %s2384_s8 }
 0xd6b   :  { %v914_v40 = vpop.permute.xlu0 %913 }
 0xd6c   :  { %v2770_v41 = vmul.f32 %v914_v40, %v899_v16  ;;  %v1882_v16 = vld [vmem:[%s3007_s0 + $0x30] sm:$0xff] }
 0xd6e   :  { %1031 = vrot.lane.b32.xlu1 %v2770_v41, %s2383_s7 }
 0xddc   :  { %v1029_v42 = vpop.permute.xlu0 %1028 }
 0xddd   :  { %2167 = vmatmul.mubr.msk.f32.vlgmr.msra.gmra.mxu0 %vm30_vm4, %v1029_v42 }
 0xdde   :  { %2170 = vmatpush3.msra.mxu0 %v2483_v23  ;;  %2185 = vmatprep.mubr.msk.f32.mxu0 %vm2382_vm0, %v2381_v0 }
 0xddf   :  { %2171 = vmatprep.subr.mxu0 %v2381_v0 }
 0xde0   :  { %v1032_v43 = vpop.permute.xlu1 %1031  ;;  %2172 = vmatpush3.msra.mxu0 %v2488_v24 }
 0xde1   :  { %v1034_v44 = vsel %vm30_vm4, %v1029_v42, %v1032_v43  ;;  %2173 = vmatprep.subr.mxu0 %v2381_v0 }
 0xde2   :  { %2156 = vmatmul.mubr.msk.f32.vlgmr.msra.gmra.mxu1 %vm144_vm5, %v1034_v44  ;;  %2174 = vmatpush3.msra.mxu0 %v2495_v25 }
 0xde3   :  { %2189 = vmatpush3.msra.mxu1 %v2425_v1  ;;  %2175 = vmatprep.subr.mxu0 %v2381_v0  ;;  %v1876_v1 = vld [vmem:[%s3007_s0 + $0x28] sm:$0xff] }
 0xde4   :  { %2190 = vmatprep.subr.mxu1 %v2381_v0  ;;  %2176 = vmatpush3.msra.mxu0 %v2502_v26 }
 0xde5   :  { %2191 = vmatpush3.msra.mxu1 %v2430_v2  ;;  %2177 = vmatprep.subr.mxu0 %v2381_v0 }
 0xde6   :  { %2192 = vmatprep.subr.mxu1 %v2381_v0  ;;  %2178 = vmatpush3.msra.mxu0 %v2509_v27 }
 0xde7   :  { %2193 = vmatpush3.msra.mxu1 %v2440_v3  ;;  %2196 = vmatprep.mubr.msk.f32.mxu1 %vm2382_vm0, %v2381_v0 }
 0xde8   :  { %2194 = vmatprep.subr.mxu1 %v2381_v0  ;;  %2179 = vmatprep.subr.mxu0 %v2381_v0 }
 0xde9   :  { %2195 = vmatpush3.msra.mxu1 %v2449_v4  ;;  %2180 = vmatpush3.msra.mxu0 %v2516_v28 }
 0xdea   :  { %2181 = vmatprep.subr.mxu0 %v2381_v0  ;;  %2199 = vmatprep.subr.mxu1 %v2381_v0 }
 0xdeb   :  { %2182 = vmatpush3.msra.mxu0 %v2524_v30 }
 0xdec   :  { %2183 = vmatprep.subr.mxu0 %v2381_v0 }
 0xded   :  { %2184 = vmatpush3.msra.mxu0 %v2533_v31 }
 0xdee   :  { %2218 = vmatprep.subr.mxu0 %v2381_v0 }
 0xe9d   :  { %v1222_v2 = vpop.f32.mrf.mxu0 }
 0xe9e   :  { %v1226_v3 = vadd.f32 %v1876_v1, %v1222_v2 }
 0xe9f   :  { %v2168_v4 = vpop.f32.mrf.mxu0 }
 0xea0   :  { %v1878_v23 = vmul.f32 -1.442695, %v1226_v3 }
 0xea2   :  { %2325 = vpow2.f32 %v1878_v23  ;;  %v1113_v24 = vpop.f32.mrf.mxu1 }
 0xea3   :  { %v1114_v25 = vadd.f32 %v1113_v24, %v2575_v37 }
 0xea4   :  { %v2157_v26 = vpop.f32.mrf.mxu1 }
 0xea5   :  { %v1874_v27 = vmul.f32 -1.442695, %v1114_v25 }
 0xea7   :  { %2327 = vpow2.f32 %v1874_v27 }
 0xea8   :  { %2329 = vtanh.f32 %v1226_v3 }
 0xeaf   :  { %v2326_v28 = vpop.eup %2325 }
 0xeb0   :  { %v1231_v30 = vadd.f32 1.0, %v2326_v28  ;;  %v1492_v28 = vld [vmem:[%s3008_s2 + $0x38] sm:$0xff] }
 0xeb2   :  { %2331 = vrcp.f32 %v1231_v30  ;;  %v1603_v30 = vld [vmem:[%s3006_s1 + $0x18] sm:$0xff] }
 0xeb3   :  { %2333 = vtanh.f32 %v1114_v25 }
 0xeb4   :  { %v2328_v31 = vpop.eup %2327 }
 0xeb5   :  { %v1121_v45 = vadd.f32 1.0, %v2328_v31  ;;  %v2330_v46 = vpop.eup %2329  ;;  %v1491_v31 = vld [vmem:[%s3008_s2 + $0x30] sm:$0xff] }
 0xeb7   :  { %2335 = vrcp.f32 %v1121_v45  ;;  %v1602_v45 = vld [vmem:[%s3006_s1 + $0x10] sm:$0xff] }
 0xebf   :  { %v2332_v47 = vpop.eup %2331 }
 0xec0   :  { %v1234_v48 = vsel %vm2469_vm3, %v2330_v46, %v2332_v47  ;;  %v2334_v49 = vpop.eup %2333  ;;  %v1490_v46 = vld [vmem:[%s3008_s2 + $0x28] sm:$0xff] }
 0xec1   :  { %1237 = vrot.lane.b32.xlu1 %v1234_v48, %s2383_s7  ;;  %v1235_v57 = vmul.f32 %v1234_v48, %v2760_v29  ;;  %v1601_v47 = vld [vmem:[%s3006_s1 + $0x8] sm:$0xff] }
 0xec4   :  { %v2336_v51 = vpop.eup %2335 }
 0xec5   :  { %v1124_v52 = vsel %vm2469_vm3, %v2334_v49, %v2336_v51  ;;  %v1489_v49 = vld [vmem:[%s3008_s2 + $0x20] sm:$0xff] }
 0xec6   :  { %1127 = vrot.lane.b32.xlu0 %v1124_v52, %s2383_s7  ;;  %v1125_v61 = vmul.f32 %v1124_v52, %v2764_v34  ;;  %v1600_v51 = vld [vmem:[%s3006_s1] sm:$0xff] }
 0xf33   :  { %v1238_v53 = vpop.permute.xlu1 %1237 }
 0xf34   :  { %v1240_v54 = vmul.f32 %v1238_v53, %v1234_v48  ;;  %v1488_v53 = vld [vmem:[%s3008_s2 + $0x18] sm:$0xff] }
 0xf36   :  { %1242 = vrot.lane.b32.xlu1 %v1240_v54, %s2384_s8  ;;  %v1487_v54 = vld [vmem:[%s3008_s2 + $0x10] sm:$0xff] }
 0xf38   :  { %v1128_v55 = vpop.permute.xlu0 %1127 }
 0xf39   :  { %v1130_v56 = vmul.f32 %v1128_v55, %v1124_v52  ;;  %v1486_v55 = vld [vmem:[%s3008_s2 + $0x8] sm:$0xff] }
 0xf3b   :  { %1132 = vrot.lane.b32.xlu0 %v1130_v56, %s2384_s8  ;;  %v1485_v56 = vld [vmem:[%s3008_s2] sm:$0xff] }
 0xfa8   :  { %v1243_v58 = vpop.permute.xlu1 %1242 }
 0xfa9   :  { %v1245_v59 = vadd.f32 %v1243_v58, %v1235_v57 }
 0xfab   :  { %2337 = vtanh.f32 %v1245_v59 }
 0xfad   :  { %v1133_v62 = vpop.permute.xlu0 %1132 }
 0xfae   :  { %v1135_v63 = vadd.f32 %v1133_v62, %v1125_v61 }
 0xfb0   :  { %2339 = vtanh.f32 %v1135_v63 }
 0xfb8   :  { %v2338_v5 = vpop.eup %2337 }
 0xfb9   :  { %1248 = vrot.lane.b32.xlu1 %v2338_v5, %s2383_s7 }
 0xfbd   :  { %v2340_v6 = vpop.eup %2339 }
 0xfbe   :  { %1138 = vrot.lane.b32.xlu0 %v2340_v6, %s2383_s7  ;;  %v1888_v6 = vld [vmem:[%s3007_s0 + $0x38] sm:$0xff] }
0x102b   :  { %v1249_v7 = vpop.permute.xlu1 %1248 }
0x102c   :  { %v1251_v8 = vmul.f32 %v1249_v7, %v1234_v48 }
0x102e   :  { %1253 = vrot.lane.b32.xlu0 %v1251_v8, %s2384_s8 }
0x1030   :  { %v1139_v9 = vpop.permute.xlu0 %1138 }
0x1031   :  { %v2822_v10 = vmul.f32 %v1139_v9, %v1124_v52 }
0x1033   :  { %1256 = vrot.lane.b32.xlu1 %v2822_v10, %s2383_s7 }
0x10a0   :  { %v1254_v11 = vpop.permute.xlu0 %1253 }
0x10a1   :  { %2197 = vmatmul.mubr.msk.f32.vlgmr.msra.gmra.mxu1 %vm30_vm4, %v1254_v11 }
0x10a2   :  { %2215 = vmatprep.mubr.msk.f32.mxu1 %vm2382_vm0, %v2381_v0  ;;  %2200 = vmatpush3.msra.mxu1 %v1492_v28 }
0x10a3   :  { %2201 = vmatprep.subr.mxu1 %v2381_v0 }
0x10a4   :  { %2202 = vmatpush3.msra.mxu1 %v1491_v31 }
0x10a5   :  { %v1257_v13 = vpop.permute.xlu1 %1256  ;;  %2203 = vmatprep.subr.mxu1 %v2381_v0 }
0x10a6   :  { %v1259_v15 = vsel %vm30_vm4, %v1254_v11, %v1257_v13  ;;  %2204 = vmatpush3.msra.mxu1 %v1490_v46  ;;  %v1493_v13 = vld [vmem:[%s3009_s3] sm:$0xff] }
0x10a7   :  { %2186 = vmatmul.mubr.msk.f32.vlgmr.msra.gmra.mxu0 %vm144_vm5, %v1259_v15  ;;  %2205 = vmatprep.subr.mxu1 %v2381_v0 }
0x10a8   :  { %2226 = vmatprep.mubr.msk.f32.mxu0 %vm2382_vm0, %v2381_v0  ;;  %2219 = vmatpush3.msra.mxu0 %v1603_v30 }
0x10a9   :  { %2220 = vmatprep.subr.mxu0 %v2381_v0  ;;  %2206 = vmatpush3.msra.mxu1 %v1489_v49 }
0x10aa   :  { %2221 = vmatpush3.msra.mxu0 %v1602_v45  ;;  %2207 = vmatprep.subr.mxu1 %v2381_v0 }
0x10ab   :  { %2222 = vmatprep.subr.mxu0 %v2381_v0  ;;  %2208 = vmatpush3.msra.mxu1 %v1488_v53 }
0x10ac   :  { %2223 = vmatpush3.msra.mxu0 %v1601_v47  ;;  %2209 = vmatprep.subr.mxu1 %v2381_v0 }
0x10ad   :  { %2224 = vmatprep.subr.mxu0 %v2381_v0  ;;  %2210 = vmatpush3.msra.mxu1 %v1487_v54 }
0x10ae   :  { %2225 = vmatpush3.msra.mxu0 %v1600_v51  ;;  %2211 = vmatprep.subr.mxu1 %v2381_v0 }
0x10af   :  { %2229 = vmatprep.subr.mxu0 %v2381_v0  ;;  %2212 = vmatpush3.msra.mxu1 %v1486_v55 }
0x10b0   :  { %2213 = vmatprep.subr.mxu1 %v2381_v0 }
0x10b1   :  { %2214 = vmatpush3.msra.mxu1 %v1485_v56 }
0x1161   :  { %v1447_v17 = vpop.f32.mrf.mxu1 }
0x1162   :  { %v1451_v18 = vadd.f32 %v1882_v16, %v1447_v17 }
0x1163   :  { %v2198_v19 = vpop.f32.mrf.mxu1 }
0x1164   :  { %v1884_v20 = vmul.f32 -1.442695, %v1451_v18 }
0x1166   :  { %2341 = vpow2.f32 %v1884_v20 }
0x1167   :  { %v1338_v21 = vpop.f32.mrf.mxu0 }
0x1168   :  { %v1339_v22 = vadd.f32 %v1338_v21, %v2575_v37 }
0x1169   :  { %v2187_v29 = vpop.f32.mrf.mxu0 }
0x116a   :  { %v1880_v32 = vmul.f32 -1.442695, %v1339_v22 }
0x116c   :  { %2343 = vpow2.f32 %v1880_v32 }
0x116d   :  { %2345 = vtanh.f32 %v1451_v18 }
0x1173   :  { %v2342_v33 = vpop.eup %2341 }
0x1174   :  { %v1456_v34 = vadd.f32 1.0, %v2342_v33 }
0x1176   :  { %2347 = vrcp.f32 %v1456_v34 }
0x1177   :  { %2349 = vtanh.f32 %v1339_v22 }
0x1179   :  { %v2344_v35 = vpop.eup %2343 }
0x117a   :  { %v1346_v36 = vadd.f32 1.0, %v2344_v35  ;;  %v2346_v38 = vpop.eup %2345 }
0x117c   :  { %2351 = vrcp.f32 %v1346_v36 }
0x1183   :  { %v2348_v39 = vpop.eup %2347 }
0x1184   :  { %v1459_v40 = vsel %vm2469_vm3, %v2346_v38, %v2348_v39  ;;  %v2350_v42 = vpop.eup %2349 }
0x1185   :  { %1462 = vrot.lane.b32.xlu1 %v1459_v40, %s2383_s7  ;;  %v1460_v4 = vmul.f32 %v1459_v40, %v1245_v59 }
0x1189   :  { %v2352_v37 = vpop.eup %2351 }
0x118a   :  { %v1349_v43 = vsel %vm2469_vm3, %v2350_v42, %v2352_v37 }
0x118b   :  { %1352 = vrot.lane.b32.xlu0 %v1349_v43, %s2383_s7  ;;  %v1350_v25 = vmul.f32 %v1349_v43, %v1135_v63 }
0x11f7   :  { %v1463_v44 = vpop.permute.xlu1 %1462 }
0x11f8   :  { %v1465_v1 = vmul.f32 %v1463_v44, %v1459_v40 }
0x11fa   :  { %1467 = vrot.lane.b32.xlu1 %v1465_v1, %s2384_s8 }
0x11fd   :  { %v1353_v2 = vpop.permute.xlu0 %1352 }
0x11fe   :  { %v1355_v3 = vmul.f32 %v1353_v2, %v1349_v43 }
0x1200   :  { %1357 = vrot.lane.b32.xlu0 %v1355_v3, %s2384_s8 }
0x126c   :  { %v1468_v23 = vpop.permute.xlu1 %1467 }
0x126d   :  { %v2845_v24 = vadd.f32 %v1468_v23, %v1460_v4 }
0x126f   :  { %2353 = vtanh.f32 %v2845_v24 }
0x1272   :  { %v1358_v26 = vpop.permute.xlu0 %1357 }
0x1273   :  { %v2848_v27 = vadd.f32 %v1358_v26, %v1350_v25 }
0x1275   :  { %2355 = vtanh.f32 %v2848_v27 }
0x127c   :  { %v2354_v48 = vpop.eup %2353 }
0x127d   :  { %1473 = vrot.lane.b32.xlu1 %v2354_v48, %s2383_s7 }
0x1282   :  { %v2356_v52 = vpop.eup %2355 }
0x1283   :  { %1363 = vrot.lane.b32.xlu0 %v2356_v52, %s2383_s7 }
0x12ef   :  { %v1474_v57 = vpop.permute.xlu1 %1473 }
0x12f0   :  { %v1476_v58 = vmul.f32 %v1474_v57, %v1459_v40 }
0x12f2   :  { %1478 = vrot.lane.b32.xlu0 %v1476_v58, %s2384_s8 }
0x12f5   :  { %v1364_v59 = vpop.permute.xlu0 %1363 }
0x12f6   :  { %v2901_v61 = vmul.f32 %v1364_v59, %v1349_v43 }
0x12f8   :  { %1481 = vrot.lane.b32.xlu1 %v2901_v61, %s2383_s7 }
0x1364   :  { %v1479_v62 = vpop.permute.xlu0 %1478 }
0x1365   :  { %2227 = vmatmul.mubr.msk.f32.vlgmr.msra.gmra.mxu0 %vm30_vm4, %v1479_v62 }
0x1366   :  { %2230 = vmatpush3.msra.mxu0 %v1492_v28  ;;  %2245 = vmatprep.mubr.msk.f32.mxu0 %vm2382_vm0, %v2381_v0 }
0x1367   :  { %2231 = vmatprep.subr.mxu0 %v2381_v0 }
0x1368   :  { %2232 = vmatpush3.msra.mxu0 %v1491_v31 }
0x1369   :  { %2233 = vmatprep.subr.mxu0 %v2381_v0 }
0x136a   :  { %v1482_v63 = vpop.permute.xlu1 %1481  ;;  %2234 = vmatpush3.msra.mxu0 %v1490_v46 }
0x136b   :  { %v1484_v5 = vsel %vm30_vm4, %v1479_v62, %v1482_v63  ;;  %2235 = vmatprep.subr.mxu0 %v2381_v0 }
0x136c   :  { %2216 = vmatmul.mubr.msk.f32.vlgmr.msra.gmra.mxu1 %vm144_vm5, %v1484_v5  ;;  %2236 = vmatpush3.msra.mxu0 %v1489_v49 }
0x136d   :  { %2237 = vmatprep.subr.mxu0 %v2381_v0 }
0x136e   :  { %2238 = vmatpush3.msra.mxu0 %v1488_v53 }
0x136f   :  { %2239 = vmatprep.subr.mxu0 %v2381_v0 }
0x1370   :  { %2240 = vmatpush3.msra.mxu0 %v1487_v54 }
0x1371   :  { %2241 = vmatprep.subr.mxu0 %v2381_v0 }
0x1372   :  { %2242 = vmatpush3.msra.mxu0 %v1486_v55 }
0x1373   :  { %2243 = vmatprep.subr.mxu0 %v2381_v0 }
0x1374   :  { %2244 = vmatpush3.msra.mxu0 %v1485_v56 }
0x1425   :  { %v1672_v7 = vpop.f32.mrf.mxu0 }
0x1426   :  { %v1676_v8 = vadd.f32 %v1888_v6, %v1672_v7 }
0x1427   :  { %v2228_v9 = vpop.f32.mrf.mxu0 }
0x1428   :  { %v1890_v11 = vmul.f32 -1.442695, %v1676_v8 }
0x142a   :  { %2357 = vpow2.f32 %v1890_v11 }
0x142c   :  { %v1563_v15 = vpop.f32.mrf.mxu1 }
0x142d   :  { %v1564_v16 = vadd.f32 %v1563_v15, %v1493_v13 }
0x142e   :  { %v2217_v17 = vpop.f32.mrf.mxu1 }
0x142f   :  { %v1886_v18 = vmul.f32 -1.442695, %v1564_v16 }
0x1431   :  { %2359 = vpow2.f32 %v1886_v18 }
0x1432   :  { %2361 = vtanh.f32 %v1676_v8 }
0x1437   :  { %v2358_v0 = vpop.eup %2357 }
0x1438   :  { %v1681_v19 = vadd.f32 1.0, %v2358_v0 }
0x143a   :  { %2363 = vrcp.f32 %v1681_v19 }
0x143b   :  { %2365 = vtanh.f32 %v1564_v16 }
0x143e   :  { %v2360_v20 = vpop.eup %2359 }
0x143f   :  { %v1571_v21 = vadd.f32 1.0, %v2360_v20  ;;  %v2362_v22 = vpop.eup %2361 }
0x1441   :  { %2367 = vrcp.f32 %v1571_v21 }
0x1447   :  { %v2364_v29 = vpop.eup %2363 }
0x1448   :  { %v1684_v32 = vsel %vm2469_vm3, %v2362_v22, %v2364_v29  ;;  %v2366_v33 = vpop.eup %2365 }
0x1449   :  { %1687 = vrot.lane.b32.xlu1 %v1684_v32, %s2383_s7  ;;  %v1685_v42 = vmul.f32 %v1684_v32, %v2845_v24 }
0x144e   :  { %v2368_v34 = vpop.eup %2367 }
0x144f   :  { %v1574_v35 = vsel %vm2469_vm3, %v2366_v33, %v2368_v34 }
0x1450   :  { %1577 = vrot.lane.b32.xlu0 %v1574_v35, %s2383_s7  ;;  %v1575_v44 = vmul.f32 %v1574_v35, %v2848_v27 }
0x14bb   :  { %v1688_v36 = vpop.permute.xlu1 %1687 }
0x14bc   :  { %v1690_v38 = vmul.f32 %v1688_v36, %v1684_v32 }
0x14be   :  { %1692 = vrot.lane.b32.xlu1 %v1690_v38, %s2384_s8 }
0x14c2   :  { %v1578_v39 = vpop.permute.xlu0 %1577 }
0x14c3   :  { %v1580_v40 = vmul.f32 %v1578_v39, %v1574_v35 }
0x14c5   :  { %1582 = vrot.lane.b32.xlu0 %v1580_v40, %s2384_s8 }
0x1530   :  { %v1693_v37 = vpop.permute.xlu1 %1692 }
0x1531   :  { %v1695_v43 = vadd.f32 %v1693_v37, %v1685_v42 }
0x1533   :  { %2369 = vtanh.f32 %v1695_v43 }
0x1537   :  { %v1583_v1 = vpop.permute.xlu0 %1582 }
0x1538   :  { %v1585_v2 = vadd.f32 %v1583_v1, %v1575_v44 }
0x153a   :  { %2371 = vtanh.f32 %v1585_v2 }
0x1540   :  { %v2370_v3 = vpop.eup %2369 }
0x1541   :  { %1698 = vrot.lane.b32.xlu1 %v2370_v3, %s2383_s7 }
0x1547   :  { %v2372_v4 = vpop.eup %2371 }
0x1548   :  { %1588 = vrot.lane.b32.xlu0 %v2372_v4, %s2383_s7 }
0x15b3   :  { %v1699_v23 = vpop.permute.xlu1 %1698 }
0x15b4   :  { %v1701_v25 = vmul.f32 %v1699_v23, %v1684_v32 }
0x15b6   :  { %1703 = vrot.lane.b32.xlu0 %v1701_v25, %s2384_s8 }
0x15ba   :  { %v1589_v26 = vpop.permute.xlu0 %1588 }
0x15bb   :  { %v1591_v24 = vmul.f32 %v1589_v26, %v1574_v35 }
0x15bd   :  { %1706 = vrot.lane.b32.xlu1 %v1591_v24, %s2383_s7 }
0x1628   :  { %v1704_v28 = vpop.permute.xlu0 %1703 }
0x1629   :  { %1823 = vst.msk [vmem:[%s3010_s5] sm:$0xff] %vm30_vm4, %v1704_v28 }
0x162f   :  { %v1707_v27 = vpop.permute.xlu1 %1706 }
0x1630   :  { %v1709_v30 = vsel %vm30_vm4, %v1704_v28, %v1707_v27 }
0x1631   :  { %2246 = vmatmul.mubr.msk.f32.vlgmr.msra.gmra.mxu0 %vm144_vm5, %v1709_v30 }
0x16f1   :  { %v1788_v31 = vpop.f32.mrf.mxu0 }
0x16f2   :  { %v1789_v45 = vadd.f32 %v1788_v31, %v1493_v13 }
0x16f3   :  { %v2247_v46 = vpop.f32.mrf.mxu0 }
0x16f4   :  { %v1892_v47 = vmul.f32 -1.442695, %v1789_v45 }
0x16f6   :  { %2373 = vpow2.f32 %v1892_v47 }
0x16f7   :  { %2375 = vtanh.f32 %v1789_v45 }
0x1703   :  { %v2374_v48 = vpop.eup %2373 }
0x1704   :  { %v1796_v49 = vadd.f32 1.0, %v2374_v48  ;;  %v2376_v51 = vpop.eup %2375 }
0x1706   :  { %2377 = vrcp.f32 %v1796_v49 }
0x1713   :  { %v2378_v52 = vpop.eup %2377 }
0x1714   :  { %v1799_v53 = vsel %vm2469_vm3, %v2376_v51, %v2378_v52 }
0x1715   :  { %1802 = vrot.lane.b32.xlu0 %v1799_v53, %s2383_s7  ;;  %v1800_v14 = vmul.f32 %v1799_v53, %v1585_v2 }
0x1787   :  { %v1803_v54 = vpop.permute.xlu0 %1802 }
0x1788   :  { %v1805_v55 = vmul.f32 %v1803_v54, %v1799_v53 }
0x178a   :  { %1807 = vrot.lane.b32.xlu1 %v1805_v55, %s2384_s8 }
0x178e   :  { %244 = vrot.lane.b32.xlu1 %v2595_v12, %s2384_s8 }
0x1792   :  { %693 = vrot.lane.b32.xlu1 %v2712_v50, %s2384_s8 }
0x1796   :  { %1143 = vrot.lane.b32.xlu1 %v2822_v10, %s2384_s8 }
0x179a   :  { %1593 = vrot.lane.b32.xlu1 %v1591_v24, %s2384_s8 }
0x179e   :  { %1827 = vrot.lane.b32.xlu1 %v1695_v43, %s2385_s21 }
0x17fc   :  { %v1808_v56 = vpop.permute.xlu1 %1807 }
0x17fd   :  { %v1810_v57 = vadd.f32 %v1808_v56, %v1800_v14 }
0x17ff   :  { %2379 = vtanh.f32 %v1810_v57 }
0x1800   :  { %v245_v58 = vpop.permute.xlu1 %244 }
0x1801   :  { %247 = vst.msk [vmem:[%s3011_s4] sm:$0xff] %vm30_vm4, %v245_v58 }
0x1804   :  { %v694_v12 = vpop.permute.xlu1 %693 }
0x1805   :  { %1863 = vst.msk [vmem:[%s3011_s4 + $0x10] sm:$0xff] %vm30_vm4, %v694_v12 }
0x1808   :  { %v1144_v50 = vpop.permute.xlu1 %1143 }
0x1809   :  { %1875 = vst.msk [vmem:[%s3011_s4 + $0x20] sm:$0xff] %vm30_vm4, %v1144_v50 }
0x180c   :  { %v2380_v10 = vpop.eup %2379  ;;  %v1594_v59 = vpop.permute.xlu1 %1593 }
0x180d   :  { %1887 = vst.msk [vmem:[%s3011_s4 + $0x30] sm:$0xff] %vm30_vm4, %v1594_v59  ;;  %1813 = vrot.lane.b32.xlu0 %v2380_v10, %s2383_s7 }
0x1810   :  { %v1828_v62 = vpop.permute.xlu1 %1827 }
0x1811   :  { %1830 = vst.msk [vmem:[%s3012_s6] sm:$0xff] %vm30_vm4, %v1828_v62  ;;  %468 = vrot.lane.b32.xlu0 %v2653_v60, %s2384_s8 }
0x1815   :  { %918 = vrot.lane.b32.xlu0 %v2770_v41, %s2384_s8 }
0x1819   :  { %1368 = vrot.lane.b32.xlu0 %v2901_v61, %s2384_s8 }
0x187f   :  { %v1814_v63 = vpop.permute.xlu0 %1813 }
0x1880   :  { %v1816_v5 = vmul.f32 %v1814_v63, %v1799_v53 }
0x1882   :  { %1818 = vrot.lane.b32.xlu0 %v1816_v5, %s2384_s8 }
0x1883   :  { %v469_v6 = vpop.permute.xlu0 %468 }
0x1884   :  { %1857 = vst.msk [vmem:[%s3011_s4 + $0x8] sm:$0xff] %vm30_vm4, %v469_v6 }
0x1886   :  { %1832 = vrot.lane.b32.xlu0 %v1810_v57, %s2385_s21 }
0x1887   :  { %v919_v7 = vpop.permute.xlu0 %918 }
0x1888   :  { %1869 = vst.msk [vmem:[%s3011_s4 + $0x18] sm:$0xff] %vm30_vm4, %v919_v7 }
0x188b   :  { %v1369_v60 = vpop.permute.xlu0 %1368 }
0x188c   :  { %1881 = vst.msk [vmem:[%s3011_s4 + $0x28] sm:$0xff] %vm30_vm4, %v1369_v60 }
0x18f4   :  { %v1819_v41 = vpop.permute.xlu0 %1818 }
0x18f5   :  { %1893 = vst.msk [vmem:[%s3011_s4 + $0x38] sm:$0xff] %vm30_vm4, %v1819_v41  ;;  %1894 = vst.msk [vmem:[%s3010_s5 + $0x8] sm:$0xff] %vm30_vm4, %v1819_v41 }
0x18f8   :  { %v1833_v61 = vpop.permute.xlu0 %1832 }
0x18f9   :  { %1895 = vst.msk [vmem:[%s3012_s6 + $0x8] sm:$0xff] %vm30_vm4, %v1833_v61 }

</bundles_post_ra>
